<compile_context>
chip_gen: v5e
topology: v5e:2x2
jax: 0.10.0
libtpu: 0.0.40
codegen_flags: <defaults>
</compile_context>

<pallas_src>
import functools

import jax
import jax.numpy as jnp
from jax import lax
from jax.experimental import pallas as pl
from jax.experimental.pallas import tpu as pltpu


def _round_up(x, m):
    return (x + m - 1) // m * m


def _vmem_limit_bytes():
    cap = None
    try:
        cap = getattr(pltpu.get_tpu_info(), "vmem_capacity_bytes", None)
    except Exception:
        cap = None
    if not cap:
        return 32 * 1024 * 1024
    return int(min(48 * 1024 * 1024, cap // 2))


def _pick_ch_tile(cp, fixed_bytes, bytes_per_128, budget):
    """Largest 128-multiple divisor of cp whose VMEM estimate fits budget."""
    t = cp
    while t > 128:
        if cp % t == 0 and fixed_bytes + bytes_per_128 * (t // 128) <= budget:
            return t
        t -= 128
    return 128


def _row_slice(ref, off, size, stride):
    if stride == 1:
        return ref[pl.ds(off, size), :]
    return ref[pl.ds(off, size, stride), :]


# ---------------------------------------------------------------------------
# Pallas kernel 1: fused direct Conv3d (tap-accumulating matmul)
#   a_refs[dz]: (Rp, Cin)  padded-input plane at depth z_out*stride + dz
#   w_ref     : (k^3, Cin, tn) weight taps
#   o_ref     : (Mc, tn) conv output rows (extended row space r = y*Wpad + x)
# ---------------------------------------------------------------------------
def _conv_tap_kernel(*refs, kd, kh, kw, wrow, stride, mrows):
    a_refs = refs[:kd]
    w_ref = refs[kd]
    o_ref = refs[kd + 1]
    acc = None
    for dz in range(kd):
        for dy in range(kh):
            for dx in range(kw):
                a = _row_slice(a_refs[dz], dy * wrow + dx, mrows, stride)
                w = w_ref[(dz * kh + dy) * kw + dx]
                d = jnp.dot(a, w, preferred_element_type=jnp.float32)
                acc = d if acc is None else acc + d
    o_ref[...] = acc.astype(o_ref.dtype)


# ---------------------------------------------------------------------------
# Pallas kernel 2: fused MaxPool3d + BatchNorm3d(eval) + LeakyReLU
#   p_refs[dz]: (Rn, tc) conv-output plane at depth z_pool*ps + dz
#   window taps are strided row loads; reduction is elementwise VPU max.
# ---------------------------------------------------------------------------
def _pool_bn_lrelu_kernel(*refs, pk, wrow, stride, mq, slope):
    p_refs = refs[:pk]
    scale_ref, bias_ref, o_ref = refs[pk], refs[pk + 1], refs[pk + 2]
    m = None
    for dz in range(pk):
        for dy in range(pk):
            for dx in range(pk):
                v = _row_slice(p_refs[dz], dy * wrow + dx, mq, stride)
                m = v if m is None else jnp.maximum(m, v)
    y = m * scale_ref[...] + bias_ref[...]
    o_ref[...] = jnp.where(y >= 0, y, slope * y)


# ---------------------------------------------------------------------------
# Fused forward (channels-last NDHWC): Conv3d -> MaxPool3d -> BN -> LeakyReLU
# ---------------------------------------------------------------------------
def conv_pool_bn_lrelu_cl(x_cl, weight, conv_cfg, pool_cfg, scale, bias, slope):
    N, D, H, W, Cin = x_cl.shape
    Cout = weight.shape[0]
    k, s, p = conv_cfg
    pk, ps, pp = pool_cfg

    Dpad, Hpad, Wpad = D + 2 * p, H + 2 * p, W + 2 * p
    Do = (Dpad - k) // s + 1
    Ho = (Hpad - k) // s + 1
    Wo = (Wpad - k) // s + 1

    Dp = (Do + 2 * pp - pk) // ps + 1
    Hp = (Ho + 2 * pp - pk) // ps + 1
    Wp = (Wo + 2 * pp - pk) // ps + 1

    Cp = _round_up(Cout, 128)
    KK = k ** 3
    vmem_limit = _vmem_limit_bytes()
    budget = int(vmem_limit * 0.6)

    # Extended-row geometry: conv row r = y*Wpad + x (valid y<Ho, x<Wo); the
    # pool reads conv rows ps*rq + dy*Wln + dx with rq = yp*Wln + xp, so the
    # conv plane must provide enough (possibly garbage) tail rows.
    Wln = Wpad if pp == 0 else Wo + 2 * pp              # pool-input plane width
    Mq = Hp * Wln                                       # pool ext rows / plane
    pool_rows_need = ps * (Mq - 1) + (pk - 1) * Wln + (pk - 1) + 1

    if pp == 0:
        Mc = _round_up(max(Ho * Wpad, pool_rows_need), 8)
    else:
        Mc = _round_up(Ho * Wpad, 8)
    Rp = _round_up(max(Hpad * Wpad,
                       s * (Mc - 1) + (k - 1) * Wpad + (k - 1) + 1), 8)

    # ---- conv stage --------------------------------------------------------
    x_pad = jnp.pad(x_cl, ((0, 0), (p, p), (p, p), (p, p), (0, 0)))
    x_r = x_pad.reshape(N, Dpad, Hpad * Wpad, Cin)
    x_r = jnp.pad(x_r, ((0, 0), (0, 0), (0, Rp - Hpad * Wpad), (0, 0)))

    wr = jnp.transpose(weight, (2, 3, 4, 1, 0)).reshape(KK, Cin, Cout)
    wr = jnp.pad(wr, ((0, 0), (0, 0), (0, Cp - Cout)))

    conv_fixed = k * Rp * _round_up(Cin, 128) * 4 * 2
    conv_per128 = (Mc + KK * _round_up(Cin, 8)) * 128 * 4 * 2
    tn = _pick_ch_tile(Cp, conv_fixed, conv_per128, budget)

    a_specs = [
        pl.BlockSpec((None, None, Rp, Cin),
                     lambda n, zo, j, dz=dz: (n, zo * s + dz, 0, 0))
        for dz in range(k)
    ]
    w_spec = pl.BlockSpec((KK, Cin, tn), lambda n, zo, j: (0, 0, j))
    conv_out_spec = pl.BlockSpec((None, None, Mc, tn),
                                 lambda n, zo, j: (n, zo, 0, j))

    conv_kernel = functools.partial(_conv_tap_kernel, kd=k, kh=k, kw=k,
                                    wrow=Wpad, stride=s, mrows=Mc)
    y_ext = pl.pallas_call(
        conv_kernel,
        out_shape=jax.ShapeDtypeStruct((N, Do, Mc, Cp), jnp.float32),
        grid_spec=pltpu.PrefetchScalarGridSpec(
            num_scalar_prefetch=0,
            grid=(N, Do, Cp // tn),
            in_specs=a_specs + [w_spec],
            out_specs=conv_out_spec),
        compiler_params=pltpu.CompilerParams(
            dimension_semantics=("parallel", "parallel", "parallel"),
            vmem_limit_bytes=vmem_limit),
    )(*([x_r] * k), wr)

    # ---- pool input (padding only materialized when pool_padding > 0) -----
    if pp == 0:
        pin, Rn = y_ext, Mc
    else:
        # TODO(synk): fold MaxPool padding into the conv output layout to
        #             avoid this copy (only taken when pool_padding > 0).
        # Finite "-inf": every window has >=1 valid element since pp < pk.
        NEG = jnp.float32(-3.0e38)
        yv = y_ext[:, :, :Ho * Wpad, :].reshape(N, Do, Ho, Wpad, Cp)
        yv = yv[:, :, :, :Wo, :]
        ypad = jnp.pad(yv, ((0, 0), (pp, pp), (pp, pp), (pp, pp), (0, 0)),
                       constant_values=NEG)
        rows0 = (Ho + 2 * pp) * Wln
        Rn = _round_up(max(rows0, pool_rows_need), 8)
        pin = ypad.reshape(N, Do + 2 * pp, rows0, Cp)
        pin = jnp.pad(pin, ((0, 0), (0, 0), (0, Rn - rows0), (0, 0)),
                      constant_values=NEG)

    scale_p = jnp.zeros((1, Cp), jnp.float32).at[0, :Cout].set(scale)
    bias_p = jnp.zeros((1, Cp), jnp.float32).at[0, :Cout].set(bias)

    pool_per128 = (pk * Rn + Mq + 2) * 128 * 4 * 2
    tc = _pick_ch_tile(Cp, 0, pool_per128, budget)

    p_specs = [
        pl.BlockSpec((None, None, Rn, tc),
                     lambda n, zp, jc, dz=dz: (n, zp * ps + dz, 0, jc))
        for dz in range(pk)
    ]
    sb_spec = pl.BlockSpec((1, tc), lambda n, zp, jc: (0, jc))
    pool_out_spec = pl.BlockSpec((None, None, Mq, tc),
                                 lambda n, zp, jc: (n, zp, 0, jc))

    pool_kernel = functools.partial(_pool_bn_lrelu_kernel, pk=pk, wrow=Wln,
                                    stride=ps, mq=Mq, slope=slope)
    z_ext = pl.pallas_call(
        pool_kernel,
        out_shape=jax.ShapeDtypeStruct((N, Dp, Mq, Cp), jnp.float32),
        grid_spec=pltpu.PrefetchScalarGridSpec(
            num_scalar_prefetch=0,
            grid=(N, Dp, Cp // tc),
            in_specs=p_specs + [sb_spec, sb_spec],
            out_specs=pool_out_spec),
        compiler_params=pltpu.CompilerParams(
            dimension_semantics=("parallel", "parallel", "parallel"),
            vmem_limit_bytes=vmem_limit),
    )(*([pin] * pk), scale_p, bias_p)

    # Drop the garbage columns / padded channels (free reshape, one slice).
    z = z_ext.reshape(N, Dp, Hp, Wln, Cp)[:, :, :, :Wp, :Cout]
    return z


class ConvLayer:
    """JAX/Pallas port of the PyTorch ConvLayer (inference / eval semantics)."""

    def __init__(self, in_channels, out_channels, drop_rate, kernel, pooling,
                 BN=True, relu_type='leaky', *, key):
        k_size, k_stride, k_pad = kernel
        self.conv_cfg = (k_size, k_stride, k_pad)
        self.pool_cfg = tuple(pooling)
        self.slope = 0.01 if relu_type == 'leaky' else 0.0
        self.drop_rate = drop_rate
        # TODO(synk): nn.Dropout train-mode RNG has no torch-matching Pallas
        #             equivalent; eval-mode (identity) semantics implemented.

        kw_, kg_, kb_, km_, kv_ = jax.random.split(key, 5)
        fan_in = in_channels * k_size ** 3
        bound = 1.0 / (fan_in ** 0.5)
        self.weight = jax.random.uniform(
            kw_, (out_channels, in_channels, k_size, k_size, k_size),
            jnp.float32, -bound, bound)
        # BatchNorm3d parameters / running stats (deterministic, non-trivial).
        self.gamma = 1.0 + 0.1 * jax.random.normal(kg_, (out_channels,), jnp.float32)
        self.beta = 0.1 * jax.random.normal(kb_, (out_channels,), jnp.float32)
        self.running_mean = 0.1 * jax.random.normal(km_, (out_channels,), jnp.float32)
        self.running_var = 1.0 + 0.1 * jax.random.uniform(kv_, (out_channels,), jnp.float32)
        self.eps = 1e-5

    def __call__(self, x):
        # NCDHW at the API boundary; channels-last (NDHWC) internally.
        # TODO(synk): expose an NDHWC call path so stacked layers avoid the
        #             per-layer transpose pair.
        x_cl = jnp.transpose(x, (0, 2, 3, 4, 1))
        scale = self.gamma / jnp.sqrt(self.running_var + self.eps)
        bias = self.beta - self.running_mean * scale
        z = conv_pool_bn_lrelu_cl(x_cl, self.weight, self.conv_cfg,
                                  self.pool_cfg, scale, bias, self.slope)
        return jnp.transpose(z, (0, 4, 1, 2, 3))      # dropout: identity (eval)


# ---------------------------------------------------------------------------
# Pure-JAX reference for self-validation
# ---------------------------------------------------------------------------
def _reference(x, layer):
    k, s, p = layer.conv_cfg
    y = lax.conv_general_dilated(x, layer.weight, (s, s, s), [(p, p)] * 3,
                                 dimension_numbers=('NCDHW', 'OIDHW', 'NCDHW'))
    pk, ps, pp = layer.pool_cfg
    y = lax.reduce_window(y, -jnp.inf, lax.max,
                          (1, 1, pk, pk, pk), (1, 1, ps, ps, ps),
                          [(0, 0), (0, 0), (pp, pp), (pp, pp), (pp, pp)])
    scale = layer.gamma / jnp.sqrt(layer.running_var + layer.eps)
    bias = layer.beta - layer.running_mean * scale
    y = y * scale[None, :, None, None, None] + bias[None, :, None, None, None]
    return jnp.where(y >= 0, y, layer.slope * y)


if __name__ == "__main__":
    key = jax.random.PRNGKey(0)
    kx, kp = jax.random.split(key)

    # Small shapes consistent with the module: Conv3d over a 5-D NCDHW volume.
    N, Cin, D, H, W = 2, 4, 8, 8, 8
    Cout = 8
    x = jax.random.normal(kx, (N, Cin, D, H, W), jnp.float32)

    layer = ConvLayer(in_channels=Cin, out_channels=Cout, drop_rate=0.1,
                      kernel=(3, 1, 1), pooling=(2, 2, 0),
                      BN=True, relu_type='leaky', key=kp)

    out = layer(x)
    out = jax.block_until_ready(out)

    ref = _reference(x, layer)
    assert out.shape == ref.shape == (N, Cout, D // 2, H // 2, W // 2), out.shape
    assert jnp.allclose(out, ref, rtol=1e-4, atol=1e-4), \
        float(jnp.max(jnp.abs(out - ref)))

    print("KERNEL_OK")
</pallas_src>

<mosaic_0001>
module attributes {stable_mosaic.version = 11 : i64} {
  func.func @_conv_tap_kernel(%arg0: i32, %arg1: i32, %arg2: i32, %arg3: memref<1x1x120x4xf32, #tpu.memory_space<vmem>>, %arg4: memref<1x1x120x4xf32, #tpu.memory_space<vmem>>, %arg5: memref<1x1x120x4xf32, #tpu.memory_space<vmem>>, %arg6: memref<27x4x128xf32, #tpu.memory_space<vmem>>, %arg7: memref<1x1x96x128xf32, #tpu.memory_space<vmem>>) attributes {dimension_semantics = [#tpu.dimension_semantics<parallel>, #tpu.dimension_semantics<parallel>, #tpu.dimension_semantics<parallel>], iteration_bounds = array<i64: 2, 8, 1>, scalar_prefetch = 0 : i64, scratch_operands = 0 : i64, tpu.core_type = #tpu.core_type<tc>, window_params = [{transform_indices = @transform_0, window_bounds = array<i64: 1, 1, 120, 4>}, {transform_indices = @transform_1, window_bounds = array<i64: 1, 1, 120, 4>}, {transform_indices = @transform_2, window_bounds = array<i64: 1, 1, 120, 4>}, {transform_indices = @transform_3, window_bounds = array<i64: 27, 4, 128>}, {transform_indices = @transform_4, window_bounds = array<i64: 1, 1, 96, 128>}]} {
    %c0 = arith.constant 0 : index
    %c0_0 = arith.constant 0 : index
    %c0_1 = arith.constant 0 : index
    %c0_2 = arith.constant 0 : index
    %0 = vector.load %arg3[%c0, %c0_0, %c0_1, %c0_2] : memref<1x1x120x4xf32, #tpu.memory_space<vmem>>, vector<1x1x96x4xf32>
    %1 = vector.shape_cast %0 : vector<1x1x96x4xf32> to vector<96x4xf32>
    %c0_3 = arith.constant 0 : index
    %c0_4 = arith.constant 0 : index
    %c0_5 = arith.constant 0 : index
    %2 = vector.load %arg6[%c0_3, %c0_4, %c0_5] : memref<27x4x128xf32, #tpu.memory_space<vmem>>, vector<1x4x128xf32>
    %3 = vector.shape_cast %2 : vector<1x4x128xf32> to vector<4x128xf32>
    %cst = arith.constant dense<0.000000e+00> : vector<96x128xf32>
    %4 = tpu.matmul %1, %3, %cst {dimension_numbers = #tpu.dot_dimension_numbers<[1], [0], [0], [1], [0, 0, 1, 1], [], []>} : vector<96x4xf32>, vector<4x128xf32>, vector<96x128xf32> -> vector<96x128xf32>
    %c0_6 = arith.constant 0 : index
    %c0_7 = arith.constant 0 : index
    %c1 = arith.constant 1 : index
    %c0_8 = arith.constant 0 : index
    %5 = vector.load %arg3[%c0_6, %c0_7, %c1, %c0_8] : memref<1x1x120x4xf32, #tpu.memory_space<vmem>>, vector<1x1x96x4xf32>
    %6 = vector.shape_cast %5 : vector<1x1x96x4xf32> to vector<96x4xf32>
    %c1_9 = arith.constant 1 : index
    %c0_10 = arith.constant 0 : index
    %c0_11 = arith.constant 0 : index
    %7 = vector.load %arg6[%c1_9, %c0_10, %c0_11] : memref<27x4x128xf32, #tpu.memory_space<vmem>>, vector<1x4x128xf32>
    %8 = vector.shape_cast %7 : vector<1x4x128xf32> to vector<4x128xf32>
    %cst_12 = arith.constant dense<0.000000e+00> : vector<96x128xf32>
    %9 = tpu.matmul %6, %8, %cst_12 {dimension_numbers = #tpu.dot_dimension_numbers<[1], [0], [0], [1], [0, 0, 1, 1], [], []>} : vector<96x4xf32>, vector<4x128xf32>, vector<96x128xf32> -> vector<96x128xf32>
    %10 = arith.addf %4, %9 : vector<96x128xf32>
    %c0_13 = arith.constant 0 : index
    %c0_14 = arith.constant 0 : index
    %c2 = arith.constant 2 : index
    %c0_15 = arith.constant 0 : index
    %11 = vector.load %arg3[%c0_13, %c0_14, %c2, %c0_15] : memref<1x1x120x4xf32, #tpu.memory_space<vmem>>, vector<1x1x96x4xf32>
    %12 = vector.shape_cast %11 : vector<1x1x96x4xf32> to vector<96x4xf32>
    %c2_16 = arith.constant 2 : index
    %c0_17 = arith.constant 0 : index
    %c0_18 = arith.constant 0 : index
    %13 = vector.load %arg6[%c2_16, %c0_17, %c0_18] : memref<27x4x128xf32, #tpu.memory_space<vmem>>, vector<1x4x128xf32>
    %14 = vector.shape_cast %13 : vector<1x4x128xf32> to vector<4x128xf32>
    %cst_19 = arith.constant dense<0.000000e+00> : vector<96x128xf32>
    %15 = tpu.matmul %12, %14, %cst_19 {dimension_numbers = #tpu.dot_dimension_numbers<[1], [0], [0], [1], [0, 0, 1, 1], [], []>} : vector<96x4xf32>, vector<4x128xf32>, vector<96x128xf32> -> vector<96x128xf32>
    %16 = arith.addf %10, %15 : vector<96x128xf32>
    %c0_20 = arith.constant 0 : index
    %c0_21 = arith.constant 0 : index
    %c10 = arith.constant 10 : index
    %c0_22 = arith.constant 0 : index
    %17 = vector.load %arg3[%c0_20, %c0_21, %c10, %c0_22] : memref<1x1x120x4xf32, #tpu.memory_space<vmem>>, vector<1x1x96x4xf32>
    %18 = vector.shape_cast %17 : vector<1x1x96x4xf32> to vector<96x4xf32>
    %c3 = arith.constant 3 : index
    %c0_23 = arith.constant 0 : index
    %c0_24 = arith.constant 0 : index
    %19 = vector.load %arg6[%c3, %c0_23, %c0_24] : memref<27x4x128xf32, #tpu.memory_space<vmem>>, vector<1x4x128xf32>
    %20 = vector.shape_cast %19 : vector<1x4x128xf32> to vector<4x128xf32>
    %cst_25 = arith.constant dense<0.000000e+00> : vector<96x128xf32>
    %21 = tpu.matmul %18, %20, %cst_25 {dimension_numbers = #tpu.dot_dimension_numbers<[1], [0], [0], [1], [0, 0, 1, 1], [], []>} : vector<96x4xf32>, vector<4x128xf32>, vector<96x128xf32> -> vector<96x128xf32>
    %22 = arith.addf %16, %21 : vector<96x128xf32>
    %c0_26 = arith.constant 0 : index
    %c0_27 = arith.constant 0 : index
    %c11 = arith.constant 11 : index
    %c0_28 = arith.constant 0 : index
    %23 = vector.load %arg3[%c0_26, %c0_27, %c11, %c0_28] : memref<1x1x120x4xf32, #tpu.memory_space<vmem>>, vector<1x1x96x4xf32>
    %24 = vector.shape_cast %23 : vector<1x1x96x4xf32> to vector<96x4xf32>
    %c4 = arith.constant 4 : index
    %c0_29 = arith.constant 0 : index
    %c0_30 = arith.constant 0 : index
    %25 = vector.load %arg6[%c4, %c0_29, %c0_30] : memref<27x4x128xf32, #tpu.memory_space<vmem>>, vector<1x4x128xf32>
    %26 = vector.shape_cast %25 : vector<1x4x128xf32> to vector<4x128xf32>
    %cst_31 = arith.constant dense<0.000000e+00> : vector<96x128xf32>
    %27 = tpu.matmul %24, %26, %cst_31 {dimension_numbers = #tpu.dot_dimension_numbers<[1], [0], [0], [1], [0, 0, 1, 1], [], []>} : vector<96x4xf32>, vector<4x128xf32>, vector<96x128xf32> -> vector<96x128xf32>
    %28 = arith.addf %22, %27 : vector<96x128xf32>
    %c0_32 = arith.constant 0 : index
    %c0_33 = arith.constant 0 : index
    %c12 = arith.constant 12 : index
    %c0_34 = arith.constant 0 : index
    %29 = vector.load %arg3[%c0_32, %c0_33, %c12, %c0_34] : memref<1x1x120x4xf32, #tpu.memory_space<vmem>>, vector<1x1x96x4xf32>
    %30 = vector.shape_cast %29 : vector<1x1x96x4xf32> to vector<96x4xf32>
    %c5 = arith.constant 5 : index
    %c0_35 = arith.constant 0 : index
    %c0_36 = arith.constant 0 : index
    %31 = vector.load %arg6[%c5, %c0_35, %c0_36] : memref<27x4x128xf32, #tpu.memory_space<vmem>>, vector<1x4x128xf32>
    %32 = vector.shape_cast %31 : vector<1x4x128xf32> to vector<4x128xf32>
    %cst_37 = arith.constant dense<0.000000e+00> : vector<96x128xf32>
    %33 = tpu.matmul %30, %32, %cst_37 {dimension_numbers = #tpu.dot_dimension_numbers<[1], [0], [0], [1], [0, 0, 1, 1], [], []>} : vector<96x4xf32>, vector<4x128xf32>, vector<96x128xf32> -> vector<96x128xf32>
    %34 = arith.addf %28, %33 : vector<96x128xf32>
    %c0_38 = arith.constant 0 : index
    %c0_39 = arith.constant 0 : index
    %c20 = arith.constant 20 : index
    %c0_40 = arith.constant 0 : index
    %35 = vector.load %arg3[%c0_38, %c0_39, %c20, %c0_40] : memref<1x1x120x4xf32, #tpu.memory_space<vmem>>, vector<1x1x96x4xf32>
    %36 = vector.shape_cast %35 : vector<1x1x96x4xf32> to vector<96x4xf32>
    %c6 = arith.constant 6 : index
    %c0_41 = arith.constant 0 : index
    %c0_42 = arith.constant 0 : index
    %37 = vector.load %arg6[%c6, %c0_41, %c0_42] : memref<27x4x128xf32, #tpu.memory_space<vmem>>, vector<1x4x128xf32>
    %38 = vector.shape_cast %37 : vector<1x4x128xf32> to vector<4x128xf32>
    %cst_43 = arith.constant dense<0.000000e+00> : vector<96x128xf32>
    %39 = tpu.matmul %36, %38, %cst_43 {dimension_numbers = #tpu.dot_dimension_numbers<[1], [0], [0], [1], [0, 0, 1, 1], [], []>} : vector<96x4xf32>, vector<4x128xf32>, vector<96x128xf32> -> vector<96x128xf32>
    %40 = arith.addf %34, %39 : vector<96x128xf32>
    %c0_44 = arith.constant 0 : index
    %c0_45 = arith.constant 0 : index
    %c21 = arith.constant 21 : index
    %c0_46 = arith.constant 0 : index
    %41 = vector.load %arg3[%c0_44, %c0_45, %c21, %c0_46] : memref<1x1x120x4xf32, #tpu.memory_space<vmem>>, vector<1x1x96x4xf32>
    %42 = vector.shape_cast %41 : vector<1x1x96x4xf32> to vector<96x4xf32>
    %c7 = arith.constant 7 : index
    %c0_47 = arith.constant 0 : index
    %c0_48 = arith.constant 0 : index
    %43 = vector.load %arg6[%c7, %c0_47, %c0_48] : memref<27x4x128xf32, #tpu.memory_space<vmem>>, vector<1x4x128xf32>
    %44 = vector.shape_cast %43 : vector<1x4x128xf32> to vector<4x128xf32>
    %cst_49 = arith.constant dense<0.000000e+00> : vector<96x128xf32>
    %45 = tpu.matmul %42, %44, %cst_49 {dimension_numbers = #tpu.dot_dimension_numbers<[1], [0], [0], [1], [0, 0, 1, 1], [], []>} : vector<96x4xf32>, vector<4x128xf32>, vector<96x128xf32> -> vector<96x128xf32>
    %46 = arith.addf %40, %45 : vector<96x128xf32>
    %c0_50 = arith.constant 0 : index
    %c0_51 = arith.constant 0 : index
    %c22 = arith.constant 22 : index
    %c0_52 = arith.constant 0 : index
    %47 = vector.load %arg3[%c0_50, %c0_51, %c22, %c0_52] : memref<1x1x120x4xf32, #tpu.memory_space<vmem>>, vector<1x1x96x4xf32>
    %48 = vector.shape_cast %47 : vector<1x1x96x4xf32> to vector<96x4xf32>
    %c8 = arith.constant 8 : index
    %c0_53 = arith.constant 0 : index
    %c0_54 = arith.constant 0 : index
    %49 = vector.load %arg6[%c8, %c0_53, %c0_54] : memref<27x4x128xf32, #tpu.memory_space<vmem>>, vector<1x4x128xf32>
    %50 = vector.shape_cast %49 : vector<1x4x128xf32> to vector<4x128xf32>
    %cst_55 = arith.constant dense<0.000000e+00> : vector<96x128xf32>
    %51 = tpu.matmul %48, %50, %cst_55 {dimension_numbers = #tpu.dot_dimension_numbers<[1], [0], [0], [1], [0, 0, 1, 1], [], []>} : vector<96x4xf32>, vector<4x128xf32>, vector<96x128xf32> -> vector<96x128xf32>
    %52 = arith.addf %46, %51 : vector<96x128xf32>
    %c0_56 = arith.constant 0 : index
    %c0_57 = arith.constant 0 : index
    %c0_58 = arith.constant 0 : index
    %c0_59 = arith.constant 0 : index
    %53 = vector.load %arg4[%c0_56, %c0_57, %c0_58, %c0_59] : memref<1x1x120x4xf32, #tpu.memory_space<vmem>>, vector<1x1x96x4xf32>
    %54 = vector.shape_cast %53 : vector<1x1x96x4xf32> to vector<96x4xf32>
    %c9 = arith.constant 9 : index
    %c0_60 = arith.constant 0 : index
    %c0_61 = arith.constant 0 : index
    %55 = vector.load %arg6[%c9, %c0_60, %c0_61] : memref<27x4x128xf32, #tpu.memory_space<vmem>>, vector<1x4x128xf32>
    %56 = vector.shape_cast %55 : vector<1x4x128xf32> to vector<4x128xf32>
    %cst_62 = arith.constant dense<0.000000e+00> : vector<96x128xf32>
    %57 = tpu.matmul %54, %56, %cst_62 {dimension_numbers = #tpu.dot_dimension_numbers<[1], [0], [0], [1], [0, 0, 1, 1], [], []>} : vector<96x4xf32>, vector<4x128xf32>, vector<96x128xf32> -> vector<96x128xf32>
    %58 = arith.addf %52, %57 : vector<96x128xf32>
    %c0_63 = arith.constant 0 : index
    %c0_64 = arith.constant 0 : index
    %c1_65 = arith.constant 1 : index
    %c0_66 = arith.constant 0 : index
    %59 = vector.load %arg4[%c0_63, %c0_64, %c1_65, %c0_66] : memref<1x1x120x4xf32, #tpu.memory_space<vmem>>, vector<1x1x96x4xf32>
    %60 = vector.shape_cast %59 : vector<1x1x96x4xf32> to vector<96x4xf32>
    %c10_67 = arith.constant 10 : index
    %c0_68 = arith.constant 0 : index
    %c0_69 = arith.constant 0 : index
    %61 = vector.load %arg6[%c10_67, %c0_68, %c0_69] : memref<27x4x128xf32, #tpu.memory_space<vmem>>, vector<1x4x128xf32>
    %62 = vector.shape_cast %61 : vector<1x4x128xf32> to vector<4x128xf32>
    %cst_70 = arith.constant dense<0.000000e+00> : vector<96x128xf32>
    %63 = tpu.matmul %60, %62, %cst_70 {dimension_numbers = #tpu.dot_dimension_numbers<[1], [0], [0], [1], [0, 0, 1, 1], [], []>} : vector<96x4xf32>, vector<4x128xf32>, vector<96x128xf32> -> vector<96x128xf32>
    %64 = arith.addf %58, %63 : vector<96x128xf32>
    %c0_71 = arith.constant 0 : index
    %c0_72 = arith.constant 0 : index
    %c2_73 = arith.constant 2 : index
    %c0_74 = arith.constant 0 : index
    %65 = vector.load %arg4[%c0_71, %c0_72, %c2_73, %c0_74] : memref<1x1x120x4xf32, #tpu.memory_space<vmem>>, vector<1x1x96x4xf32>
    %66 = vector.shape_cast %65 : vector<1x1x96x4xf32> to vector<96x4xf32>
    %c11_75 = arith.constant 11 : index
    %c0_76 = arith.constant 0 : index
    %c0_77 = arith.constant 0 : index
    %67 = vector.load %arg6[%c11_75, %c0_76, %c0_77] : memref<27x4x128xf32, #tpu.memory_space<vmem>>, vector<1x4x128xf32>
    %68 = vector.shape_cast %67 : vector<1x4x128xf32> to vector<4x128xf32>
    %cst_78 = arith.constant dense<0.000000e+00> : vector<96x128xf32>
    %69 = tpu.matmul %66, %68, %cst_78 {dimension_numbers = #tpu.dot_dimension_numbers<[1], [0], [0], [1], [0, 0, 1, 1], [], []>} : vector<96x4xf32>, vector<4x128xf32>, vector<96x128xf32> -> vector<96x128xf32>
    %70 = arith.addf %64, %69 : vector<96x128xf32>
    %c0_79 = arith.constant 0 : index
    %c0_80 = arith.constant 0 : index
    %c10_81 = arith.constant 10 : index
    %c0_82 = arith.constant 0 : index
    %71 = vector.load %arg4[%c0_79, %c0_80, %c10_81, %c0_82] : memref<1x1x120x4xf32, #tpu.memory_space<vmem>>, vector<1x1x96x4xf32>
    %72 = vector.shape_cast %71 : vector<1x1x96x4xf32> to vector<96x4xf32>
    %c12_83 = arith.constant 12 : index
    %c0_84 = arith.constant 0 : index
    %c0_85 = arith.constant 0 : index
    %73 = vector.load %arg6[%c12_83, %c0_84, %c0_85] : memref<27x4x128xf32, #tpu.memory_space<vmem>>, vector<1x4x128xf32>
    %74 = vector.shape_cast %73 : vector<1x4x128xf32> to vector<4x128xf32>
    %cst_86 = arith.constant dense<0.000000e+00> : vector<96x128xf32>
    %75 = tpu.matmul %72, %74, %cst_86 {dimension_numbers = #tpu.dot_dimension_numbers<[1], [0], [0], [1], [0, 0, 1, 1], [], []>} : vector<96x4xf32>, vector<4x128xf32>, vector<96x128xf32> -> vector<96x128xf32>
    %76 = arith.addf %70, %75 : vector<96x128xf32>
    %c0_87 = arith.constant 0 : index
    %c0_88 = arith.constant 0 : index
    %c11_89 = arith.constant 11 : index
    %c0_90 = arith.constant 0 : index
    %77 = vector.load %arg4[%c0_87, %c0_88, %c11_89, %c0_90] : memref<1x1x120x4xf32, #tpu.memory_space<vmem>>, vector<1x1x96x4xf32>
    %78 = vector.shape_cast %77 : vector<1x1x96x4xf32> to vector<96x4xf32>
    %c13 = arith.constant 13 : index
    %c0_91 = arith.constant 0 : index
    %c0_92 = arith.constant 0 : index
    %79 = vector.load %arg6[%c13, %c0_91, %c0_92] : memref<27x4x128xf32, #tpu.memory_space<vmem>>, vector<1x4x128xf32>
    %80 = vector.shape_cast %79 : vector<1x4x128xf32> to vector<4x128xf32>
    %cst_93 = arith.constant dense<0.000000e+00> : vector<96x128xf32>
    %81 = tpu.matmul %78, %80, %cst_93 {dimension_numbers = #tpu.dot_dimension_numbers<[1], [0], [0], [1], [0, 0, 1, 1], [], []>} : vector<96x4xf32>, vector<4x128xf32>, vector<96x128xf32> -> vector<96x128xf32>
    %82 = arith.addf %76, %81 : vector<96x128xf32>
    %c0_94 = arith.constant 0 : index
    %c0_95 = arith.constant 0 : index
    %c12_96 = arith.constant 12 : index
    %c0_97 = arith.constant 0 : index
    %83 = vector.load %arg4[%c0_94, %c0_95, %c12_96, %c0_97] : memref<1x1x120x4xf32, #tpu.memory_space<vmem>>, vector<1x1x96x4xf32>
    %84 = vector.shape_cast %83 : vector<1x1x96x4xf32> to vector<96x4xf32>
    %c14 = arith.constant 14 : index
    %c0_98 = arith.constant 0 : index
    %c0_99 = arith.constant 0 : index
    %85 = vector.load %arg6[%c14, %c0_98, %c0_99] : memref<27x4x128xf32, #tpu.memory_space<vmem>>, vector<1x4x128xf32>
    %86 = vector.shape_cast %85 : vector<1x4x128xf32> to vector<4x128xf32>
    %cst_100 = arith.constant dense<0.000000e+00> : vector<96x128xf32>
    %87 = tpu.matmul %84, %86, %cst_100 {dimension_numbers = #tpu.dot_dimension_numbers<[1], [0], [0], [1], [0, 0, 1, 1], [], []>} : vector<96x4xf32>, vector<4x128xf32>, vector<96x128xf32> -> vector<96x128xf32>
    %88 = arith.addf %82, %87 : vector<96x128xf32>
    %c0_101 = arith.constant 0 : index
    %c0_102 = arith.constant 0 : index
    %c20_103 = arith.constant 20 : index
    %c0_104 = arith.constant 0 : index
    %89 = vector.load %arg4[%c0_101, %c0_102, %c20_103, %c0_104] : memref<1x1x120x4xf32, #tpu.memory_space<vmem>>, vector<1x1x96x4xf32>
    %90 = vector.shape_cast %89 : vector<1x1x96x4xf32> to vector<96x4xf32>
    %c15 = arith.constant 15 : index
    %c0_105 = arith.constant 0 : index
    %c0_106 = arith.constant 0 : index
    %91 = vector.load %arg6[%c15, %c0_105, %c0_106] : memref<27x4x128xf32, #tpu.memory_space<vmem>>, vector<1x4x128xf32>
    %92 = vector.shape_cast %91 : vector<1x4x128xf32> to vector<4x128xf32>
    %cst_107 = arith.constant dense<0.000000e+00> : vector<96x128xf32>
    %93 = tpu.matmul %90, %92, %cst_107 {dimension_numbers = #tpu.dot_dimension_numbers<[1], [0], [0], [1], [0, 0, 1, 1], [], []>} : vector<96x4xf32>, vector<4x128xf32>, vector<96x128xf32> -> vector<96x128xf32>
    %94 = arith.addf %88, %93 : vector<96x128xf32>
    %c0_108 = arith.constant 0 : index
    %c0_109 = arith.constant 0 : index
    %c21_110 = arith.constant 21 : index
    %c0_111 = arith.constant 0 : index
    %95 = vector.load %arg4[%c0_108, %c0_109, %c21_110, %c0_111] : memref<1x1x120x4xf32, #tpu.memory_space<vmem>>, vector<1x1x96x4xf32>
    %96 = vector.shape_cast %95 : vector<1x1x96x4xf32> to vector<96x4xf32>
    %c16 = arith.constant 16 : index
    %c0_112 = arith.constant 0 : index
    %c0_113 = arith.constant 0 : index
    %97 = vector.load %arg6[%c16, %c0_112, %c0_113] : memref<27x4x128xf32, #tpu.memory_space<vmem>>, vector<1x4x128xf32>
    %98 = vector.shape_cast %97 : vector<1x4x128xf32> to vector<4x128xf32>
    %cst_114 = arith.constant dense<0.000000e+00> : vector<96x128xf32>
    %99 = tpu.matmul %96, %98, %cst_114 {dimension_numbers = #tpu.dot_dimension_numbers<[1], [0], [0], [1], [0, 0, 1, 1], [], []>} : vector<96x4xf32>, vector<4x128xf32>, vector<96x128xf32> -> vector<96x128xf32>
    %100 = arith.addf %94, %99 : vector<96x128xf32>
    %c0_115 = arith.constant 0 : index
    %c0_116 = arith.constant 0 : index
    %c22_117 = arith.constant 22 : index
    %c0_118 = arith.constant 0 : index
    %101 = vector.load %arg4[%c0_115, %c0_116, %c22_117, %c0_118] : memref<1x1x120x4xf32, #tpu.memory_space<vmem>>, vector<1x1x96x4xf32>
    %102 = vector.shape_cast %101 : vector<1x1x96x4xf32> to vector<96x4xf32>
    %c17 = arith.constant 17 : index
    %c0_119 = arith.constant 0 : index
    %c0_120 = arith.constant 0 : index
    %103 = vector.load %arg6[%c17, %c0_119, %c0_120] : memref<27x4x128xf32, #tpu.memory_space<vmem>>, vector<1x4x128xf32>
    %104 = vector.shape_cast %103 : vector<1x4x128xf32> to vector<4x128xf32>
    %cst_121 = arith.constant dense<0.000000e+00> : vector<96x128xf32>
    %105 = tpu.matmul %102, %104, %cst_121 {dimension_numbers = #tpu.dot_dimension_numbers<[1], [0], [0], [1], [0, 0, 1, 1], [], []>} : vector<96x4xf32>, vector<4x128xf32>, vector<96x128xf32> -> vector<96x128xf32>
    %106 = arith.addf %100, %105 : vector<96x128xf32>
    %c0_122 = arith.constant 0 : index
    %c0_123 = arith.constant 0 : index
    %c0_124 = arith.constant 0 : index
    %c0_125 = arith.constant 0 : index
    %107 = vector.load %arg5[%c0_122, %c0_123, %c0_124, %c0_125] : memref<1x1x120x4xf32, #tpu.memory_space<vmem>>, vector<1x1x96x4xf32>
    %108 = vector.shape_cast %107 : vector<1x1x96x4xf32> to vector<96x4xf32>
    %c18 = arith.constant 18 : index
    %c0_126 = arith.constant 0 : index
    %c0_127 = arith.constant 0 : index
    %109 = vector.load %arg6[%c18, %c0_126, %c0_127] : memref<27x4x128xf32, #tpu.memory_space<vmem>>, vector<1x4x128xf32>
    %110 = vector.shape_cast %109 : vector<1x4x128xf32> to vector<4x128xf32>
    %cst_128 = arith.constant dense<0.000000e+00> : vector<96x128xf32>
    %111 = tpu.matmul %108, %110, %cst_128 {dimension_numbers = #tpu.dot_dimension_numbers<[1], [0], [0], [1], [0, 0, 1, 1], [], []>} : vector<96x4xf32>, vector<4x128xf32>, vector<96x128xf32> -> vector<96x128xf32>
    %112 = arith.addf %106, %111 : vector<96x128xf32>
    %c0_129 = arith.constant 0 : index
    %c0_130 = arith.constant 0 : index
    %c1_131 = arith.constant 1 : index
    %c0_132 = arith.constant 0 : index
    %113 = vector.load %arg5[%c0_129, %c0_130, %c1_131, %c0_132] : memref<1x1x120x4xf32, #tpu.memory_space<vmem>>, vector<1x1x96x4xf32>
    %114 = vector.shape_cast %113 : vector<1x1x96x4xf32> to vector<96x4xf32>
    %c19 = arith.constant 19 : index
    %c0_133 = arith.constant 0 : index
    %c0_134 = arith.constant 0 : index
    %115 = vector.load %arg6[%c19, %c0_133, %c0_134] : memref<27x4x128xf32, #tpu.memory_space<vmem>>, vector<1x4x128xf32>
    %116 = vector.shape_cast %115 : vector<1x4x128xf32> to vector<4x128xf32>
    %cst_135 = arith.constant dense<0.000000e+00> : vector<96x128xf32>
    %117 = tpu.matmul %114, %116, %cst_135 {dimension_numbers = #tpu.dot_dimension_numbers<[1], [0], [0], [1], [0, 0, 1, 1], [], []>} : vector<96x4xf32>, vector<4x128xf32>, vector<96x128xf32> -> vector<96x128xf32>
    %118 = arith.addf %112, %117 : vector<96x128xf32>
    %c0_136 = arith.constant 0 : index
    %c0_137 = arith.constant 0 : index
    %c2_138 = arith.constant 2 : index
    %c0_139 = arith.constant 0 : index
    %119 = vector.load %arg5[%c0_136, %c0_137, %c2_138, %c0_139] : memref<1x1x120x4xf32, #tpu.memory_space<vmem>>, vector<1x1x96x4xf32>
    %120 = vector.shape_cast %119 : vector<1x1x96x4xf32> to vector<96x4xf32>
    %c20_140 = arith.constant 20 : index
    %c0_141 = arith.constant 0 : index
    %c0_142 = arith.constant 0 : index
    %121 = vector.load %arg6[%c20_140, %c0_141, %c0_142] : memref<27x4x128xf32, #tpu.memory_space<vmem>>, vector<1x4x128xf32>
    %122 = vector.shape_cast %121 : vector<1x4x128xf32> to vector<4x128xf32>
    %cst_143 = arith.constant dense<0.000000e+00> : vector<96x128xf32>
    %123 = tpu.matmul %120, %122, %cst_143 {dimension_numbers = #tpu.dot_dimension_numbers<[1], [0], [0], [1], [0, 0, 1, 1], [], []>} : vector<96x4xf32>, vector<4x128xf32>, vector<96x128xf32> -> vector<96x128xf32>
    %124 = arith.addf %118, %123 : vector<96x128xf32>
    %c0_144 = arith.constant 0 : index
    %c0_145 = arith.constant 0 : index
    %c10_146 = arith.constant 10 : index
    %c0_147 = arith.constant 0 : index
    %125 = vector.load %arg5[%c0_144, %c0_145, %c10_146, %c0_147] : memref<1x1x120x4xf32, #tpu.memory_space<vmem>>, vector<1x1x96x4xf32>
    %126 = vector.shape_cast %125 : vector<1x1x96x4xf32> to vector<96x4xf32>
    %c21_148 = arith.constant 21 : index
    %c0_149 = arith.constant 0 : index
    %c0_150 = arith.constant 0 : index
    %127 = vector.load %arg6[%c21_148, %c0_149, %c0_150] : memref<27x4x128xf32, #tpu.memory_space<vmem>>, vector<1x4x128xf32>
    %128 = vector.shape_cast %127 : vector<1x4x128xf32> to vector<4x128xf32>
    %cst_151 = arith.constant dense<0.000000e+00> : vector<96x128xf32>
    %129 = tpu.matmul %126, %128, %cst_151 {dimension_numbers = #tpu.dot_dimension_numbers<[1], [0], [0], [1], [0, 0, 1, 1], [], []>} : vector<96x4xf32>, vector<4x128xf32>, vector<96x128xf32> -> vector<96x128xf32>
    %130 = arith.addf %124, %129 : vector<96x128xf32>
    %c0_152 = arith.constant 0 : index
    %c0_153 = arith.constant 0 : index
    %c11_154 = arith.constant 11 : index
    %c0_155 = arith.constant 0 : index
    %131 = vector.load %arg5[%c0_152, %c0_153, %c11_154, %c0_155] : memref<1x1x120x4xf32, #tpu.memory_space<vmem>>, vector<1x1x96x4xf32>
    %132 = vector.shape_cast %131 : vector<1x1x96x4xf32> to vector<96x4xf32>
    %c22_156 = arith.constant 22 : index
    %c0_157 = arith.constant 0 : index
    %c0_158 = arith.constant 0 : index
    %133 = vector.load %arg6[%c22_156, %c0_157, %c0_158] : memref<27x4x128xf32, #tpu.memory_space<vmem>>, vector<1x4x128xf32>
    %134 = vector.shape_cast %133 : vector<1x4x128xf32> to vector<4x128xf32>
    %cst_159 = arith.constant dense<0.000000e+00> : vector<96x128xf32>
    %135 = tpu.matmul %132, %134, %cst_159 {dimension_numbers = #tpu.dot_dimension_numbers<[1], [0], [0], [1], [0, 0, 1, 1], [], []>} : vector<96x4xf32>, vector<4x128xf32>, vector<96x128xf32> -> vector<96x128xf32>
    %136 = arith.addf %130, %135 : vector<96x128xf32>
    %c0_160 = arith.constant 0 : index
    %c0_161 = arith.constant 0 : index
    %c12_162 = arith.constant 12 : index
    %c0_163 = arith.constant 0 : index
    %137 = vector.load %arg5[%c0_160, %c0_161, %c12_162, %c0_163] : memref<1x1x120x4xf32, #tpu.memory_space<vmem>>, vector<1x1x96x4xf32>
    %138 = vector.shape_cast %137 : vector<1x1x96x4xf32> to vector<96x4xf32>
    %c23 = arith.constant 23 : index
    %c0_164 = arith.constant 0 : index
    %c0_165 = arith.constant 0 : index
    %139 = vector.load %arg6[%c23, %c0_164, %c0_165] : memref<27x4x128xf32, #tpu.memory_space<vmem>>, vector<1x4x128xf32>
    %140 = vector.shape_cast %139 : vector<1x4x128xf32> to vector<4x128xf32>
    %cst_166 = arith.constant dense<0.000000e+00> : vector<96x128xf32>
    %141 = tpu.matmul %138, %140, %cst_166 {dimension_numbers = #tpu.dot_dimension_numbers<[1], [0], [0], [1], [0, 0, 1, 1], [], []>} : vector<96x4xf32>, vector<4x128xf32>, vector<96x128xf32> -> vector<96x128xf32>
    %142 = arith.addf %136, %141 : vector<96x128xf32>
    %c0_167 = arith.constant 0 : index
    %c0_168 = arith.constant 0 : index
    %c20_169 = arith.constant 20 : index
    %c0_170 = arith.constant 0 : index
    %143 = vector.load %arg5[%c0_167, %c0_168, %c20_169, %c0_170] : memref<1x1x120x4xf32, #tpu.memory_space<vmem>>, vector<1x1x96x4xf32>
    %144 = vector.shape_cast %143 : vector<1x1x96x4xf32> to vector<96x4xf32>
    %c24 = arith.constant 24 : index
    %c0_171 = arith.constant 0 : index
    %c0_172 = arith.constant 0 : index
    %145 = vector.load %arg6[%c24, %c0_171, %c0_172] : memref<27x4x128xf32, #tpu.memory_space<vmem>>, vector<1x4x128xf32>
    %146 = vector.shape_cast %145 : vector<1x4x128xf32> to vector<4x128xf32>
    %cst_173 = arith.constant dense<0.000000e+00> : vector<96x128xf32>
    %147 = tpu.matmul %144, %146, %cst_173 {dimension_numbers = #tpu.dot_dimension_numbers<[1], [0], [0], [1], [0, 0, 1, 1], [], []>} : vector<96x4xf32>, vector<4x128xf32>, vector<96x128xf32> -> vector<96x128xf32>
    %148 = arith.addf %142, %147 : vector<96x128xf32>
    %c0_174 = arith.constant 0 : index
    %c0_175 = arith.constant 0 : index
    %c21_176 = arith.constant 21 : index
    %c0_177 = arith.constant 0 : index
    %149 = vector.load %arg5[%c0_174, %c0_175, %c21_176, %c0_177] : memref<1x1x120x4xf32, #tpu.memory_space<vmem>>, vector<1x1x96x4xf32>
    %150 = vector.shape_cast %149 : vector<1x1x96x4xf32> to vector<96x4xf32>
    %c25 = arith.constant 25 : index
    %c0_178 = arith.constant 0 : index
    %c0_179 = arith.constant 0 : index
    %151 = vector.load %arg6[%c25, %c0_178, %c0_179] : memref<27x4x128xf32, #tpu.memory_space<vmem>>, vector<1x4x128xf32>
    %152 = vector.shape_cast %151 : vector<1x4x128xf32> to vector<4x128xf32>
    %cst_180 = arith.constant dense<0.000000e+00> : vector<96x128xf32>
    %153 = tpu.matmul %150, %152, %cst_180 {dimension_numbers = #tpu.dot_dimension_numbers<[1], [0], [0], [1], [0, 0, 1, 1], [], []>} : vector<96x4xf32>, vector<4x128xf32>, vector<96x128xf32> -> vector<96x128xf32>
    %154 = arith.addf %148, %153 : vector<96x128xf32>
    %c0_181 = arith.constant 0 : index
    %c0_182 = arith.constant 0 : index
    %c22_183 = arith.constant 22 : index
    %c0_184 = arith.constant 0 : index
    %155 = vector.load %arg5[%c0_181, %c0_182, %c22_183, %c0_184] : memref<1x1x120x4xf32, #tpu.memory_space<vmem>>, vector<1x1x96x4xf32>
    %156 = vector.shape_cast %155 : vector<1x1x96x4xf32> to vector<96x4xf32>
    %c26 = arith.constant 26 : index
    %c0_185 = arith.constant 0 : index
    %c0_186 = arith.constant 0 : index
    %157 = vector.load %arg6[%c26, %c0_185, %c0_186] : memref<27x4x128xf32, #tpu.memory_space<vmem>>, vector<1x4x128xf32>
    %158 = vector.shape_cast %157 : vector<1x4x128xf32> to vector<4x128xf32>
    %cst_187 = arith.constant dense<0.000000e+00> : vector<96x128xf32>
    %159 = tpu.matmul %156, %158, %cst_187 {dimension_numbers = #tpu.dot_dimension_numbers<[1], [0], [0], [1], [0, 0, 1, 1], [], []>} : vector<96x4xf32>, vector<4x128xf32>, vector<96x128xf32> -> vector<96x128xf32>
    %160 = arith.addf %154, %159 : vector<96x128xf32>
    %c0_188 = arith.constant 0 : index
    %c0_189 = arith.constant 0 : index
    %c0_190 = arith.constant 0 : index
    %c0_191 = arith.constant 0 : index
    %161 = vector.load %arg7[%c0_188, %c0_189, %c0_190, %c0_191] : memref<1x1x96x128xf32, #tpu.memory_space<vmem>>, vector<1x1x96x128xf32>
    %162 = vector.shape_cast %161 : vector<1x1x96x128xf32> to vector<96x128xf32>
    %163 = vector.shape_cast %160 : vector<96x128xf32> to vector<1x1x96x128xf32>
    tpu.vector_store %arg7[%c0_188, %c0_189, %c0_190, %c0_191], %163 {strides = array<i32>} : memref<1x1x96x128xf32, #tpu.memory_space<vmem>>, vector<1x1x96x128xf32>,
    return
  }
  func.func @transform_0(%arg0: i32, %arg1: i32, %arg2: i32) -> (i32, i32, i32, i32) {
    %c1_i32 = arith.constant 1 : i32
    %0 = arith.muli %arg1, %c1_i32 : i32
    %c0_i32 = arith.constant 0 : i32
    %1 = arith.addi %0, %c0_i32 : i32
    %c0_i32_0 = arith.constant 0 : i32
    %c0_i32_1 = arith.constant 0 : i32
    %c0_i32_2 = arith.constant 0 : i32
    return %arg0, %1, %c0_i32_0, %c0_i32_1 : i32, i32, i32, i32
  }
  func.func @transform_1(%arg0: i32, %arg1: i32, %arg2: i32) -> (i32, i32, i32, i32) {
    %c1_i32 = arith.constant 1 : i32
    %0 = arith.muli %arg1, %c1_i32 : i32
    %c1_i32_0 = arith.constant 1 : i32
    %1 = arith.addi %0, %c1_i32_0 : i32
    %c0_i32 = arith.constant 0 : i32
    %c0_i32_1 = arith.constant 0 : i32
    %c0_i32_2 = arith.constant 0 : i32
    return %arg0, %1, %c0_i32, %c0_i32_1 : i32, i32, i32, i32
  }
  func.func @transform_2(%arg0: i32, %arg1: i32, %arg2: i32) -> (i32, i32, i32, i32) {
    %c1_i32 = arith.constant 1 : i32
    %0 = arith.muli %arg1, %c1_i32 : i32
    %c2_i32 = arith.constant 2 : i32
    %1 = arith.addi %0, %c2_i32 : i32
    %c0_i32 = arith.constant 0 : i32
    %c0_i32_0 = arith.constant 0 : i32
    %c0_i32_1 = arith.constant 0 : i32
    return %arg0, %1, %c0_i32, %c0_i32_0 : i32, i32, i32, i32
  }
  func.func @transform_3(%arg0: i32, %arg1: i32, %arg2: i32) -> (i32, i32, i32) {
    %c0_i32 = arith.constant 0 : i32
    %c0_i32_0 = arith.constant 0 : i32
    %c0_i32_1 = arith.constant 0 : i32
    return %c0_i32, %c0_i32_0, %arg2 : i32, i32, i32
  }
  func.func @transform_4(%arg0: i32, %arg1: i32, %arg2: i32) -> (i32, i32, i32, i32) {
    %c0_i32 = arith.constant 0 : i32
    %c0_i32_0 = arith.constant 0 : i32
    return %arg0, %arg1, %c0_i32, %arg2 : i32, i32, i32, i32
  }
}

</mosaic_0001>

<bundles_post_ra>
// kernel: tpu_custom_call.1
= control target key start
LH: loop header
LB: loop body
LE: loop exit
PB: predicated region body
PF: predicated region fallthrough
CT: control target
= control target key end

     0   :  { %9 = vsyncpa [#allocation3], 0  ;;  %s5466_s0 = inlined_call_operand.vmem [shape: f32[2,10,120,4], index: 0, kind: input, shape index: {}]   ;;  %s5467_s1 = inlined_call_operand.vmem [shape: f32[2,10,120,4], index: 1, kind: input, shape index: {}]   ;;  %s5468_s2 = inlined_call_operand.vmem [shape: f32[2,10,120,4], index: 2, kind: input, shape index: {}]   ;;  %s5469_s3 = inlined_call_operand.vmem [shape: f32[27,4,128], index: 3, kind: input, shape index: {}]   ;;  %s5470_s4 = inlined_call_operand.hbm [shape: f32[2,8,96,128], index: 4, kind: output, shape index: {}]  }
   0x1   :  { %11 = vsyncpa [#allocation3 + $0x1], 0  ;;  %s4267_s15 = smov 0   ;;  %s4269_s16 = smov 0  }
   0x2   :  { %s4271_s17 = smov 0   ;;  %s4273_s18 = smov 0  }
   0x3   :  { %s4275_s19 = smov 0   ;;  %s4277_s20 = smov 0  }
   0x4   :  { %s4279_s21 = smov 0   ;;  %s4281_s22 = smov 0  }
   0x5 LB: > { %s3672_s23 = sadd.s32 4294967295, %s4238_s22   ;;  %s3673_s24 = sadd.s32 4294967294, %s4238_s22   ;;  %s4238_s22 = sphi %s4281_s22, %s17_s22   ;;  %s4234_s21 = sphi %s4279_s21, %s5479_s21   ;;  %s4230_s20 = sphi %s4277_s20, %s5478_s20   ;;  %s4226_s19 = sphi %s4275_s19, %s5477_s19   ;;  %s4222_s18 = sphi %s4273_s18, %s5476_s18   ;;  %s4218_s17 = sphi %s4271_s17, %s5475_s17   ;;  %s4214_s16 = sphi %s4269_s16, %s5474_s16   ;;  %s4210_s15 = sphi %s4267_s15, %s5473_s15  }
   0x6   : > { %s32_s25 = sadd.s32 1, %s4230_s20  ;;  %s36_s26 = sadd.s32 1, %s4234_s21 }
   0x7   : > { %p34_p0 = scmp.ge.s32.totalorder %s32_s25, 8  ;;  %p171_p1 = scmp.ne.s32.totalorder %s4218_s17, %s4214_s16 }
   0x8   : > { %p172_p2 = scmp.eq.s32.totalorder %s3672_s23, 15  ;;  %p177_p5 = scmp.ne.s32.totalorder %s4214_s16, %s4210_s15 }
   0x9   : > { %s5481_s25 = smov (%p34_p0, %s32_s25), 0  ;;  %s5483_s26 = smov (!%p34_p0, %s36_s26), %s4234_s21 }
   0xa   : > { %s155_s27 = ssub.s32 %s4230_s20, %s5481_s25  ;;  %p4318_p3 = por %p172_p2, %p171_p1 }
   0xb   : > { %p38_p4 = scmp.ge.s32.totalorder %s5483_s26, 2  ;;  %p178_p6 = scmp.eq.s32.totalorder %s3673_s24, 15 }
   0xc   : > { %p3677_p7 = scmp.ge.s32.totalorder %s4238_s22, 1  ;;  %p243_p9 = scmp.lt.s32.totalorder %s4238_s22, 17 }
   0xd   : > { %s5485_s26 = smov (%p38_p4, %s5483_s26), 0  ;;  %p4327_p8 = por %p178_p6, %p177_p5 }
   0xe   : > { %s154_s30 = ssub.s32 %s4234_s21, %s5485_s26  ;;  %s161_s5 = sadd.s32 1, %s4218_s17 }
   0xf   : > { %s156_s6 = sor.u32 %s155_s27, %s154_s30  ;;  %p244_p10 = pnand %p3677_p7, %p243_p9 }
  0x10   : > { %p159_p11 = scmp.eq.s32.totalorder %s156_s6, 0  ;;  %p297_p12 = scmp.lt.s32.totalorder (!%p244_p10), %s4226_s19, 1 }
  0x11   : > { %247 = sbr.rel (%p244_p10) target bundleno = 816 (0x330), region = 36  ;;  %p299_p13 = scmp.lt.s32.totalorder (!%p244_p10), %s4222_s18, 9 }
  0x12   : > { %s4336_s7 = scalar_select %p159_p11, %s4218_s17, %s161_s5  }
  0x13   : > { %s306_s5 = sadd.s32 (!%p244_p10), 1, %s4222_s18  ;;  %s317_s27 = sadd.s32 (!%p244_p10), 2, %s4222_s18 }
  0x14   : > { %p309_p0 = scmp.lt.s32.totalorder (!%p244_p10), %s306_s5, 9  ;;  %p320_p1 = scmp.lt.s32.totalorder (!%p244_p10), %s317_s27, 9 }
  0x16   : > { %v3681_v0 = vld [vmem:[%s5469_s3 + $0x4] sm:$0xf]  ;;  %vm396_vm0 = vcmask 1043456   ;;  %v344_v1 = vld [vmem:[%s5469_s3] sm:$0xf]  ;;  %s298_s24 = scalar_select %p297_p12, %s4226_s19, 1 }
  0x17   : > { %4061 = vmatpush.msk.msra.mxu3 %vm396_vm0, %v3681_v0  ;;  %v3708_v2 = vld [vmem:[%s5469_s3 + $0x8] sm:$0xf]  ;;  %v3764_v3 = vld [vmem:[%s5469_s3 + $0x18] sm:$0xf]  ;;  %3682 = vmatpush.msk.msra.mxu0 %vm396_vm0, %v3681_v0  ;;  %v3736_v4 = vld [vmem:[%s5469_s3 + $0x10] sm:$0xf] }
  0x18   : > { %3709 = vmatpush.msk.msra.mxu2 %vm396_vm0, %v3708_v2  ;;  %v3750_v5 = vld [vmem:[%s5469_s3 + $0x14] sm:$0xf]  ;;  %s300_s8 = scalar_select %p299_p13, %s4222_s18, 9  ;;  %3695 = vmatpush.msk.msra.mxu1 %vm396_vm0, %v344_v1  ;;  %vm359_vm1 = vcmask 31744   ;;  %v3722_v22 = vld [vmem:[%s5469_s3 + $0xc] sm:$0xf] }
  0x19   : > { %4062 = vmatpush.msk.msrb.mxu3 %vm396_vm0, %v344_v1  ;;  %s4366_s9 = smul.u32 150, %s298_s24  ;;  %3737 = vmatpush.msk.msrb.mxu0 %vm396_vm0, %v3736_v4  ;;  %v3820_v31 = vld [vmem:[%s5469_s3 + $0x28] sm:$0xf]  ;;  %v3778_v36 = vld [vmem:[%s5469_s3 + $0x1c] sm:$0xf]  ;;  %s5487_s5 = smov (!%p309_p0, %s306_s5), 9 }
  0x1a   : > { %3765 = vmatpush.msk.msrb.mxu2 %vm396_vm0, %v3764_v3  ;;  %3751 = vmatpush.msk.msrb.mxu1 %vm396_vm0, %v3750_v5  ;;  %s4065_s10 = smul.u32 15, %s300_s8  ;;  %v3792_v37 = vld [vmem:[%s5469_s3 + $0x20] sm:$0xf]  ;;  %v3806_v38 = vld [vmem:[%s5469_s3 + $0x24] sm:$0xf]  ;;  %s5489_s27 = smov (!%p320_p1, %s317_s27), 9 }
  0x1b   : > { %s4069_s24 = smul.u32 12, %s4222_s18 }
  0x1c   : > { %s303_s11 = sadd.s32 %s4366_s9, %s4065_s10 }
  0x1d   : > { %s3678_s12 = sshll.u32 %s303_s11, 3 }
  0x1e   : > { %s4374_s23 = scalar_lea.vmem %s5466_s0, %s3678_s12  ;;  %s4067_s12 = smul.u32 15, %s5487_s5 }
  0x1f   : > { %v354_v6 = vld [vmem:[%s4374_s23 + $0x49] sm:$0xff]  ;;  %v345_v8 = vld [vmem:[%s4374_s23 + $0x1] sm:$0xff]  ;;  %v355_v10 = vld [vmem:[%s4374_s23 + $0x51] sm:$0xff] }
  0x20   : > { %v545_v7 = vld [vmem:[%s4374_s23 + $0x2] sm:$0xff]  ;;  %3692 = vmatmul.msk.f32.vlgmr.msra.gmra.mxu3 %vm359_vm1, %v354_v6  ;;  %3683 = vmatmul.msk.f32.vlgmr.msra.gmra.mxu0 %vm359_vm1, %v345_v8  ;;  %v4387_v11 = vld [vmem:[%s4374_s23 + $0xa] sm:$0xff]  ;;  %v356_v14 = vld [vmem:[%s4374_s23 + $0x59] sm:$0xff]  ;;  %s313_s13 = sadd.s32 %s4067_s12, %s4366_s9 }
  0x21   : > { %3710 = vmatmul.msk.f32.vlgmr.msra.gmra.mxu2 %vm359_vm1, %v545_v7  ;;  %v332_v9 = vld [vmem:[%s4374_s23] sm:$0xff]  ;;  %4063 = vmatpush.msk.msra.mxu3 %vm396_vm0, %v3708_v2  ;;  %v346_v12 = vld [vmem:[%s4374_s23 + $0x9] sm:$0xff]  ;;  %v4398_v15 = vld [vmem:[%s4374_s23 + $0x12] sm:$0xff]  ;;  %s3679_s14 = sshll.u32 %s313_s13, 3  ;;  %s4068_s13 = smul.u32 15, %s5489_s27 }
  0x22   : > { %3696 = vmatmul.msk.f32.vlgmr.msra.gmra.mxu1 %vm359_vm1, %v332_v9  ;;  %v333_v13 = vld [vmem:[%s4374_s23 + $0x8] sm:$0xff]  ;;  %v347_v16 = vld [vmem:[%s4374_s23 + $0x11] sm:$0xff]  ;;  %v4409_v19 = vld [vmem:[%s4374_s23 + $0x1a] sm:$0xff]  ;;  %3821 = vmatpush.msk.msra.mxu2 %vm396_vm0, %v3820_v31  ;;  %s4624_s30 = scalar_lea.vmem %s5467_s1, %s3679_s14 }
  0x23   : > { %v334_v17 = vld [vmem:[%s4374_s23 + $0x10] sm:$0xff]  ;;  %v341_v18 = vld [vmem:[%s4374_s23 + $0x48] sm:$0xff]  ;;  %v348_v20 = vld [vmem:[%s4374_s23 + $0x19] sm:$0xff]  ;;  %3793 = vmatpush.msk.msra.mxu0 %vm396_vm0, %v3792_v37  ;;  %3807 = vmatpush.msk.msra.mxu1 %vm396_vm0, %v3806_v38  ;;  %s324_s14 = sadd.s32 %s4068_s13, %s4366_s9 }
  0x24   : > { %v335_v21 = vld [vmem:[%s4374_s23 + $0x18] sm:$0xff]  ;;  %v342_v23 = vld [vmem:[%s4374_s23 + $0x50] sm:$0xff]  ;;  %v4424_v24 = vld [vmem:[%s4374_s23 + $0x22] sm:$0xff] }
  0x25   : > { %v349_v25 = vld [vmem:[%s4374_s23 + $0x21] sm:$0xff]  ;;  %v343_v27 = vld [vmem:[%s4374_s23 + $0x58] sm:$0xff]  ;;  %v4435_v28 = vld [vmem:[%s4374_s23 + $0x2a] sm:$0xff] }
  0x26   : > { %v336_v26 = vld [vmem:[%s4374_s23 + $0x20] sm:$0xff]  ;;  %v350_v29 = vld [vmem:[%s4374_s23 + $0x29] sm:$0xff]  ;;  %v551_v33 = vld [vmem:[%s4374_s23 + $0x32] sm:$0xff] }
  0x27   : > { %v337_v30 = vld [vmem:[%s4374_s23 + $0x28] sm:$0xff]  ;;  %v351_v34 = vld [vmem:[%s4374_s23 + $0x31] sm:$0xff]  ;;  %v552_v40 = vld [vmem:[%s4374_s23 + $0x3a] sm:$0xff] }
  0x28   : > { %3693 = vmatmul.msk.f32.gmra.mxu3 %vm359_vm1, %v355_v10  ;;  %3684 = vmatmul.msk.f32.gmra.mxu0 %vm359_vm1, %v346_v12  ;;  %v4449_v32 = vld [vmem:[%s4374_s23 + $0x4a] sm:$0xff]  ;;  %v4472_v39 = vld [vmem:[%s4374_s23 + $0x52] sm:$0xff]  ;;  %v4483_v43 = vld [vmem:[%s4374_s23 + $0x5a] sm:$0xff] }
  0x29   : > { %3711 = vmatmul.msk.f32.gmra.mxu2 %vm359_vm1, %v4387_v11  ;;  %v338_v35 = vld [vmem:[%s4374_s23 + $0x30] sm:$0xff]  ;;  %v352_v41 = vld [vmem:[%s4374_s23 + $0x39] sm:$0xff]  ;;  %v553_v44 = vld [vmem:[%s4374_s23 + $0x42] sm:$0xff] }
  0x2a   : > { %3697 = vmatmul.msk.f32.gmra.mxu1 %vm359_vm1, %v333_v13  ;;  %v339_v42 = vld [vmem:[%s4374_s23 + $0x38] sm:$0xff]  ;;  %v353_v45 = vld [vmem:[%s4374_s23 + $0x41] sm:$0xff]  ;;  %v781_v48 = vld [vmem:[%s4374_s23 + $0xb] sm:$0xff] }
  0x2b   : > { %v340_v46 = vld [vmem:[%s4374_s23 + $0x40] sm:$0xff]  ;;  %v1017_v47 = vld [vmem:[%s4374_s23 + $0x14] sm:$0xff]  ;;  %v899_v49 = vld [vmem:[%s4374_s23 + $0xc] sm:$0xff] }
  0x2c   : > { %v1018_v50 = vld [vmem:[%s4374_s23 + $0x1c] sm:$0xff]  ;;  %v782_v51 = vld [vmem:[%s4374_s23 + $0x13] sm:$0xff]  ;;  %v1019_v52 = vld [vmem:[%s4374_s23 + $0x24] sm:$0xff] }
  0x2d   : > { %v783_v53 = vld [vmem:[%s4374_s23 + $0x1b] sm:$0xff]  ;;  %v1020_v54 = vld [vmem:[%s4374_s23 + $0x2c] sm:$0xff]  ;;  %v784_v55 = vld [vmem:[%s4374_s23 + $0x23] sm:$0xff] }
  0x2e   : > { %v1021_v56 = vld [vmem:[%s4374_s23 + $0x34] sm:$0xff]  ;;  %v785_v57 = vld [vmem:[%s4374_s23 + $0x2b] sm:$0xff]  ;;  %v1022_v58 = vld [vmem:[%s4374_s23 + $0x3c] sm:$0xff] }
  0x2f   : > { %v786_v59 = vld [vmem:[%s4374_s23 + $0x33] sm:$0xff]  ;;  %v1023_v60 = vld [vmem:[%s4374_s23 + $0x44] sm:$0xff]  ;;  %v787_v61 = vld [vmem:[%s4374_s23 + $0x3b] sm:$0xff] }
  0x30   : > { %3694 = vmatmul.msk.f32.gmra.mxu3 %vm359_vm1, %v356_v14  ;;  %3685 = vmatmul.msk.f32.gmra.mxu0 %vm359_vm1, %v347_v16  ;;  %v1024_v62 = vld [vmem:[%s4374_s23 + $0x4c] sm:$0xff]  ;;  %v788_v1 = vld [vmem:[%s4374_s23 + $0x43] sm:$0xff]  ;;  %v1025_v4 = vld [vmem:[%s4374_s23 + $0x54] sm:$0xff] }
  0x31   : > { %3712 = vmatmul.msk.f32.gmra.mxu2 %vm359_vm1, %v4398_v15  ;;  %v789_v7 = vld [vmem:[%s4374_s23 + $0x4b] sm:$0xff]  ;;  %v1026_v12 = vld [vmem:[%s4374_s23 + $0x5c] sm:$0xff] }
  0x32   : > { %3698 = vmatmul.msk.f32.gmra.mxu1 %vm359_vm1, %v334_v17  ;;  %v3834_v8 = vld [vmem:[%s5469_s3 + $0x2c] sm:$0xf]  ;;  %v3848_v16 = vld [vmem:[%s5469_s3 + $0x30] sm:$0xf]  ;;  %v3862_v17 = vld [vmem:[%s5469_s3 + $0x34] sm:$0xf] }
  0x33   : > { %v792_v31 = vld [vmem:[%s4374_s23 + $0x63] sm:$0xff] }
  0x38   : > { %3705 = vmatmul.msk.f32.vlgmr.msrb.gmra.mxu3 %vm359_vm1, %v341_v18  ;;  %3686 = vmatmul.msk.f32.gmra.mxu0 %vm359_vm1, %v348_v20  ;;  %v1027_v20 = vld [vmem:[%s4374_s23 + $0x64] sm:$0xff] }
  0x39   : > { %3713 = vmatmul.msk.f32.gmra.mxu2 %vm359_vm1, %v4409_v19  ;;  %3723 = vmatpush.msk.msrb.mxu3 %vm396_vm0, %v3722_v22 }
  0x3a   : > { %3699 = vmatmul.msk.f32.gmra.mxu1 %vm359_vm1, %v335_v21 }
  0x40   : > { %3706 = vmatmul.msk.f32.gmra.mxu3 %vm359_vm1, %v342_v23  ;;  %3687 = vmatmul.msk.f32.gmra.mxu0 %vm359_vm1, %v349_v25  ;;  %v791_v23 = vld [vmem:[%s4374_s23 + $0x5b] sm:$0xff] }
  0x41   : > { %3714 = vmatmul.msk.f32.gmra.mxu2 %vm359_vm1, %v4424_v24 }
  0x42   : > { %3700 = vmatmul.msk.f32.gmra.mxu1 %vm359_vm1, %v336_v26 }
  0x48   : > { %3707 = vmatmul.msk.f32.gmra.mxu3 %vm359_vm1, %v343_v27  ;;  %3688 = vmatmul.msk.f32.gmra.mxu0 %vm359_vm1, %v350_v29  ;;  %v674_v27 = vld [vmem:[%s4374_s23 + $0x62] sm:$0xff] }
  0x49   : > { %3715 = vmatmul.msk.f32.gmra.mxu2 %vm359_vm1, %v4435_v28 }
  0x4a   : > { %3701 = vmatmul.msk.f32.gmra.mxu1 %vm359_vm1, %v337_v30 }
  0x50   : > { %3719 = vmatmul.msk.f32.vlgmr.msra.gmra.mxu3 %vm359_vm1, %v4449_v32  ;;  %3689 = vmatmul.msk.f32.gmra.mxu0 %vm359_vm1, %v351_v34 }
  0x51   : > { %3716 = vmatmul.msk.f32.gmra.mxu2 %vm359_vm1, %v551_v33  ;;  %3779 = vmatpush.msk.msra.mxu3 %vm396_vm0, %v3778_v36  ;;  %v1489_v36 = vld [vmem:[%s4624_s30 + $0x1] sm:$0xff] }
  0x52   : > { %3702 = vmatmul.msk.f32.gmra.mxu1 %vm359_vm1, %v338_v35  ;;  %v1135_v35 = vld [vmem:[%s4374_s23 + $0x15] sm:$0xff] }
  0x58   : > { %3720 = vmatmul.msk.f32.gmra.mxu3 %vm359_vm1, %v4472_v39  ;;  %3690 = vmatmul.msk.f32.gmra.mxu0 %vm359_vm1, %v352_v41 }
  0x59   : > { %3717 = vmatmul.msk.f32.gmra.mxu2 %vm359_vm1, %v552_v40 }
  0x5a   : > { %3703 = vmatmul.msk.f32.gmra.mxu1 %vm359_vm1, %v339_v42 }
  0x60   : > { %3721 = vmatmul.msk.f32.gmra.mxu3 %vm359_vm1, %v4483_v43  ;;  %3691 = vmatmul.msk.f32.gmra.mxu0 %vm359_vm1, %v353_v45  ;;  %v1490_v45 = vld [vmem:[%s4624_s30 + $0x9] sm:$0xff] }
  0x61   : > { %3718 = vmatmul.msk.f32.gmra.mxu2 %vm359_vm1, %v553_v44 }
  0x62   : > { %3704 = vmatmul.msk.f32.gmra.mxu1 %vm359_vm1, %v340_v46 }
  0x68   : > { %3724 = vmatmul.msk.f32.vlgmr.msrb.gmra.mxu3 %vm359_vm1, %v4387_v11  ;;  %3738 = vmatmul.msk.f32.vlgmr.msrb.gmra.mxu0 %vm359_vm1, %v781_v48  ;;  %v3876_v11 = vld [vmem:[%s5469_s3 + $0x38] sm:$0xf]  ;;  %v1254_v48 = vld [vmem:[%s4374_s23 + $0x1e] sm:$0xff] }
  0x69   : > { %3766 = vmatmul.msk.f32.vlgmr.msrb.gmra.mxu2 %vm359_vm1, %v1017_v47  ;;  %3835 = vmatpush.msk.msrb.mxu3 %vm396_vm0, %v3834_v8  ;;  %v1374_v8 = vld [vmem:[%s4624_s30 + $0x18] sm:$0xff] }
  0x6a   : > { %3752 = vmatmul.msk.f32.vlgmr.msrb.gmra.mxu1 %vm359_vm1, %v899_v49  ;;  %3877 = vmatpush.msk.msrb.mxu2 %vm396_vm0, %v3876_v11  ;;  %v1372_v49 = vld [vmem:[%s4624_s30 + $0x8] sm:$0xff] }
  0x6b   : > { %3849 = vmatpush.msk.msrb.mxu0 %vm396_vm0, %v3848_v16  ;;  %3863 = vmatpush.msk.msrb.mxu1 %vm396_vm0, %v3862_v17  ;;  %v1493_v16 = vld [vmem:[%s4624_s30 + $0x21] sm:$0xff] }
  0x70   : > { %3725 = vmatmul.msk.f32.gmra.mxu3 %vm359_vm1, %v4398_v15  ;;  %3739 = vmatmul.msk.f32.gmra.mxu0 %vm359_vm1, %v782_v51  ;;  %v790_v15 = vld [vmem:[%s4374_s23 + $0x53] sm:$0xff] }
  0x71   : > { %3767 = vmatmul.msk.f32.gmra.mxu2 %vm359_vm1, %v1018_v50 }
  0x72   : > { %3753 = vmatmul.msk.f32.gmra.mxu1 %vm359_vm1, %v1017_v47 }
  0x78   : > { %3726 = vmatmul.msk.f32.gmra.mxu3 %vm359_vm1, %v4409_v19  ;;  %3740 = vmatmul.msk.f32.gmra.mxu0 %vm359_vm1, %v783_v53  ;;  %v1137_v53 = vld [vmem:[%s4374_s23 + $0x25] sm:$0xff] }
  0x79   : > { %3768 = vmatmul.msk.f32.gmra.mxu2 %vm359_vm1, %v1019_v52 }
  0x7a   : > { %3754 = vmatmul.msk.f32.gmra.mxu1 %vm359_vm1, %v1018_v50 }
  0x80   : > { %3727 = vmatmul.msk.f32.gmra.mxu3 %vm359_vm1, %v4424_v24  ;;  %3741 = vmatmul.msk.f32.gmra.mxu0 %vm359_vm1, %v784_v55 }
  0x81   : > { %3769 = vmatmul.msk.f32.gmra.mxu2 %vm359_vm1, %v1020_v54 }
  0x82   : > { %3755 = vmatmul.msk.f32.gmra.mxu1 %vm359_vm1, %v1019_v52 }
  0x88   : > { %3728 = vmatmul.msk.f32.gmra.mxu3 %vm359_vm1, %v4435_v28  ;;  %3742 = vmatmul.msk.f32.gmra.mxu0 %vm359_vm1, %v785_v57  ;;  %v1028_v28 = vld [vmem:[%s4374_s23 + $0x6c] sm:$0xff] }
  0x89   : > { %3770 = vmatmul.msk.f32.gmra.mxu2 %vm359_vm1, %v1021_v56  ;;  %v1255_v57 = vld [vmem:[%s4374_s23 + $0x26] sm:$0xff] }
  0x8a   : > { %3756 = vmatmul.msk.f32.gmra.mxu1 %vm359_vm1, %v1020_v54  ;;  %v1491_v54 = vld [vmem:[%s4624_s30 + $0x11] sm:$0xff] }
  0x90   : > { %3729 = vmatmul.msk.f32.gmra.mxu3 %vm359_vm1, %v551_v33  ;;  %3743 = vmatmul.msk.f32.gmra.mxu0 %vm359_vm1, %v786_v59 }
  0x91   : > { %3771 = vmatmul.msk.f32.gmra.mxu2 %vm359_vm1, %v1022_v58 }
  0x92   : > { %3757 = vmatmul.msk.f32.gmra.mxu1 %vm359_vm1, %v1021_v56 }
  0x98   : > { %3730 = vmatmul.msk.f32.gmra.mxu3 %vm359_vm1, %v552_v40  ;;  %3744 = vmatmul.msk.f32.gmra.mxu0 %vm359_vm1, %v787_v61  ;;  %v1371_v40 = vld [vmem:[%s4624_s30] sm:$0xff] }
  0x99   : > { %3772 = vmatmul.msk.f32.gmra.mxu2 %vm359_vm1, %v1023_v60 }
  0x9a   : > { %3758 = vmatmul.msk.f32.gmra.mxu1 %vm359_vm1, %v1022_v58  ;;  %v1373_v58 = vld [vmem:[%s4624_s30 + $0x10] sm:$0xff] }
  0x9d   : > { %v4542_v63 = vpop.f32.mrf.mxu0 }
  0x9f   : > { %v4544_v0 = vpop.f32.mrf.mxu1 }
  0xa0   : > { %3731 = vmatmul.msk.f32.gmra.mxu3 %vm359_vm1, %v553_v44  ;;  %3745 = vmatmul.msk.f32.gmra.mxu0 %vm359_vm1, %v788_v1  ;;  %v1136_v44 = vld [vmem:[%s4374_s23 + $0x1d] sm:$0xff]  ;;  %v510_v17 = vadd.f32 %v4544_v0, %v4542_v63  ;;  %v1494_v0 = vld [vmem:[%s4624_s30 + $0x29] sm:$0xff] }
  0xa1   : > { %3773 = vmatmul.msk.f32.gmra.mxu2 %vm359_vm1, %v1024_v62  ;;  %v1492_v1 = vld [vmem:[%s4624_s30 + $0x19] sm:$0xff] }
  0xa2   : > { %3759 = vmatmul.msk.f32.gmra.mxu1 %vm359_vm1, %v1023_v60  ;;  %v1140_v63 = vld [vmem:[%s4374_s23 + $0x3d] sm:$0xff] }
  0xa3   : > { %v444_v2 = vpop.f32.mrf.mxu3 }
  0xa4   : > { %v4551_v3 = vpop.f32.mrf.mxu2 }
  0xa5   : > { %v4554_v5 = vpop.f32.mrf.mxu0 }
  0xa7   : > { %v4556_v6 = vpop.f32.mrf.mxu1 }
  0xa8   : > { %3732 = vmatmul.msk.f32.gmra.mxu3 %vm359_vm1, %v4449_v32  ;;  %3746 = vmatmul.msk.f32.gmra.mxu0 %vm359_vm1, %v789_v7  ;;  %v1256_v7 = vld [vmem:[%s4374_s23 + $0x2e] sm:$0xff] }
  0xa9   : > { %3774 = vmatmul.msk.f32.gmra.mxu2 %vm359_vm1, %v1025_v4 }
  0xaa   : > { %3760 = vmatmul.msk.f32.gmra.mxu1 %vm359_vm1, %v1024_v62  ;;  %v1138_v62 = vld [vmem:[%s4374_s23 + $0x2d] sm:$0xff] }
  0xab   : > { %v447_v9 = vpop.f32.mrf.mxu3 }
  0xac   : > { %v4568_v10 = vpop.f32.mrf.mxu2 }
  0xad   : > { %v4576_v13 = vpop.f32.mrf.mxu0 }
  0xaf   : > { %v4578_v14 = vpop.f32.mrf.mxu1 }
  0xb0   : > { %3733 = vmatmul.msk.f32.gmra.mxu3 %vm359_vm1, %v4472_v39  ;;  %3747 = vmatmul.msk.f32.gmra.mxu0 %vm359_vm1, %v790_v15  ;;  %v1253_v39 = vld [vmem:[%s4374_s23 + $0x16] sm:$0xff] }
  0xb1   : > { %3775 = vmatmul.msk.f32.gmra.mxu2 %vm359_vm1, %v1026_v12  ;;  %v1139_v15 = vld [vmem:[%s4374_s23 + $0x35] sm:$0xff] }
  0xb2   : > { %3761 = vmatmul.msk.f32.gmra.mxu1 %vm359_vm1, %v1025_v4 }
  0xb3   : > { %v450_v18 = vpop.f32.mrf.mxu3 }
  0xb4   : > { %v4594_v19 = vpop.f32.mrf.mxu2 }
  0xb5   : > { %v4597_v21 = vpop.f32.mrf.mxu0 }
  0xb7   : > { %v4599_v22 = vpop.f32.mrf.mxu1 }
  0xb8   : > { %3734 = vmatmul.msk.f32.gmra.mxu3 %vm359_vm1, %v4483_v43  ;;  %3748 = vmatmul.msk.f32.gmra.mxu0 %vm359_vm1, %v791_v23  ;;  %v1257_v23 = vld [vmem:[%s4374_s23 + $0x36] sm:$0xff] }
  0xb9   : > { %3776 = vmatmul.msk.f32.gmra.mxu2 %vm359_vm1, %v1027_v20 }
  0xba   : > { %3762 = vmatmul.msk.f32.gmra.mxu1 %vm359_vm1, %v1026_v12 }
  0xbb   : > { %v536_v24 = vpop.f32.mrf.mxu3 }
  0xbc   : > { %v4607_v25 = vpop.f32.mrf.mxu2  ;;  %v537_v26 = vadd.f32 %v536_v24, %v444_v2  ;;  %v1375_v24 = vld [vmem:[%s4624_s30 + $0x20] sm:$0xff] }
  0xbd   : > { %v4612_v29 = vpop.f32.mrf.mxu0 }
  0xbf   : > { %v4614_v30 = vpop.f32.mrf.mxu1 }
  0xc0   : > { %3735 = vmatmul.msk.f32.gmra.mxu3 %vm359_vm1, %v674_v27  ;;  %3749 = vmatmul.msk.f32.gmra.mxu0 %vm359_vm1, %v792_v31 }
  0xc1   : > { %3777 = vmatmul.msk.f32.gmra.mxu2 %vm359_vm1, %v1028_v28 }
  0xc2   : > { %3763 = vmatmul.msk.f32.gmra.mxu1 %vm359_vm1, %v1027_v20 }
  0xc3   : > { %v539_v32 = vpop.f32.mrf.mxu3 }
  0xc4   : > { %v4626_v33 = vpop.f32.mrf.mxu2  ;;  %v540_v34 = vadd.f32 %v539_v32, %v447_v9  ;;  %v513_v32 = vadd.f32 %v4556_v6, %v4554_v5 }
  0xc5   : > { %v4630_v37 = vpop.f32.mrf.mxu0 }
  0xc7   : > { %v4632_v38 = vpop.f32.mrf.mxu1 }
  0xc8   : > { %3780 = vmatmul.msk.f32.vlgmr.msra.gmra.mxu3 %vm359_vm1, %v1135_v35  ;;  %3794 = vmatmul.msk.f32.vlgmr.msra.gmra.mxu0 %vm359_vm1, %v1253_v39  ;;  %v1258_v39 = vld [vmem:[%s4374_s23 + $0x3e] sm:$0xff] }
  0xc9   : > { %3822 = vmatmul.msk.f32.vlgmr.msra.gmra.mxu2 %vm359_vm1, %v1489_v36 }
  0xca   : > { %3808 = vmatmul.msk.f32.vlgmr.msra.gmra.mxu1 %vm359_vm1, %v1371_v40  ;;  %v1376_v40 = vld [vmem:[%s4624_s30 + $0x28] sm:$0xff] }
  0xcb   : > { %v542_v41 = vpop.f32.mrf.mxu3 }
  0xcc   : > { %v4640_v42 = vpop.f32.mrf.mxu2  ;;  %v543_v43 = vadd.f32 %v542_v41, %v450_v18 }
  0xcd   : > { %v4644_v46 = vpop.f32.mrf.mxu0 }
  0xcf   : > { %v4646_v47 = vpop.f32.mrf.mxu1 }
  0xd0   : > { %3781 = vmatmul.msk.f32.gmra.mxu3 %vm359_vm1, %v1136_v44  ;;  %3795 = vmatmul.msk.f32.gmra.mxu0 %vm359_vm1, %v1254_v48  ;;  %v1495_v48 = vld [vmem:[%s4624_s30 + $0x31] sm:$0xff] }
  0xd1   : > { %3823 = vmatmul.msk.f32.gmra.mxu2 %vm359_vm1, %v1490_v45  ;;  %v1141_v45 = vld [vmem:[%s4374_s23 + $0x45] sm:$0xff] }
  0xd2   : > { %3809 = vmatmul.msk.f32.gmra.mxu1 %vm359_vm1, %v1372_v49  ;;  %v516_v49 = vadd.f32 %v4578_v14, %v4576_v13 }
  0xd3   : > { %v642_v50 = vpop.f32.mrf.mxu3 }
  0xd4   : > { %v4654_v51 = vpop.f32.mrf.mxu2  ;;  %v4656_v52 = vadd.f32 %v642_v50, %v537_v26  ;;  %v651_v26 = vadd.f32 %v4551_v3, %v510_v17  ;;  %v652_v3 = vadd.f32 %v4568_v10, %v513_v32  ;;  %v653_v10 = vadd.f32 %v4594_v19, %v516_v49  ;;  %v1262_v49 = vld [vmem:[%s4374_s23 + $0x5e] sm:$0xff] }
  0xd5   : > { %v4660_v55 = vpop.f32.mrf.mxu0 }
  0xd7   : > { %v4662_v56 = vpop.f32.mrf.mxu1 }
  0xd8   : > { %3782 = vmatmul.msk.f32.gmra.mxu3 %vm359_vm1, %v1137_v53  ;;  %3796 = vmatmul.msk.f32.gmra.mxu0 %vm359_vm1, %v1255_v57  ;;  %v1259_v57 = vld [vmem:[%s4374_s23 + $0x46] sm:$0xff] }
  0xd9   : > { %3824 = vmatmul.msk.f32.gmra.mxu2 %vm359_vm1, %v1491_v54 }
  0xda   : > { %3810 = vmatmul.msk.f32.gmra.mxu1 %vm359_vm1, %v1373_v58  ;;  %v1377_v58 = vld [vmem:[%s4624_s30 + $0x30] sm:$0xff] }
  0xdb   : > { %v645_v59 = vpop.f32.mrf.mxu3 }
  0xdc   : > { %v4670_v60 = vpop.f32.mrf.mxu2  ;;  %v4672_v61 = vadd.f32 %v645_v59, %v540_v34 }
  0xdd   : > { %v4676_v2 = vpop.f32.mrf.mxu0 }
  0xdf   : > { %v4678_v4 = vpop.f32.mrf.mxu1 }
  0xe0   : > { %3783 = vmatmul.msk.f32.gmra.mxu3 %vm359_vm1, %v1138_v62  ;;  %3797 = vmatmul.msk.f32.gmra.mxu0 %vm359_vm1, %v1256_v7  ;;  %v1142_v7 = vld [vmem:[%s4374_s23 + $0x4d] sm:$0xff] }
  0xe1   : > { %3825 = vmatmul.msk.f32.gmra.mxu2 %vm359_vm1, %v1492_v1 }
  0xe2   : > { %3811 = vmatmul.msk.f32.gmra.mxu1 %vm359_vm1, %v1374_v8  ;;  %v1496_v8 = vld [vmem:[%s4624_s30 + $0x39] sm:$0xff] }
  0xe3   : > { %v648_v9 = vpop.f32.mrf.mxu3 }
  0xe4   : > { %v4686_v11 = vpop.f32.mrf.mxu2  ;;  %v4688_v12 = vadd.f32 %v648_v9, %v543_v43  ;;  %v519_v9 = vadd.f32 %v4599_v22, %v4597_v21 }
  0xe5   : > { %v851_v18 = vpop.f32.mrf.mxu0 }
  0xe6   : > { %v654_v19 = vadd.f32 %v4607_v25, %v519_v9  ;;  %v3890_v25 = vld [vmem:[%s5469_s3 + $0x3c] sm:$0xf]  ;;  %v1263_v9 = vld [vmem:[%s4374_s23 + $0x66] sm:$0xff] }
  0xe7   : > { %v969_v20 = vpop.f32.mrf.mxu1  ;;  %3891 = vmatpush.msk.msra.mxu3 %vm396_vm0, %v3890_v25 }
  0xe8   : > { %3784 = vmatmul.msk.f32.gmra.mxu3 %vm359_vm1, %v1139_v15  ;;  %3798 = vmatmul.msk.f32.gmra.mxu0 %vm359_vm1, %v1257_v23 }
  0xe9   : > { %3826 = vmatmul.msk.f32.gmra.mxu2 %vm359_vm1, %v1493_v16 }
  0xea   : > { %3812 = vmatmul.msk.f32.gmra.mxu1 %vm359_vm1, %v1375_v24 }
  0xeb   : > { %v733_v27 = vpop.f32.mrf.mxu3 }
  0xec   : > { %v1087_v28 = vpop.f32.mrf.mxu2  ;;  %v769_v31 = vadd.f32 %v733_v27, %v651_v26  ;;  %v1143_v27 = vld [vmem:[%s4374_s23 + $0x55] sm:$0xff] }
  0xed   : > { %v854_v35 = vpop.f32.mrf.mxu0 }
  0xee   : > { %v887_v34 = vadd.f32 %v851_v18, %v769_v31  ;;  %v1260_v18 = vld [vmem:[%s4374_s23 + $0x4e] sm:$0xff]  ;;  %v522_v31 = vadd.f32 %v4614_v30, %v4612_v29 }
  0xef   : > { %v972_v36 = vpop.f32.mrf.mxu1 }
  0xf0   : > { %v1005_v41 = vadd.f32 %v969_v20, %v887_v34  ;;  %3785 = vmatmul.msk.f32.gmra.mxu3 %vm359_vm1, %v1140_v63  ;;  %3799 = vmatmul.msk.f32.gmra.mxu0 %vm359_vm1, %v1258_v39  ;;  %v1378_v20 = vld [vmem:[%s4624_s30 + $0x38] sm:$0xff]  ;;  %v655_v29 = vadd.f32 %v4626_v33, %v522_v31  ;;  %v3932_v33 = vld [vmem:[%s5469_s3 + $0x48] sm:$0xf] }
  0xf1   : > { %3827 = vmatmul.msk.f32.gmra.mxu2 %vm359_vm1, %v1494_v0  ;;  %v1261_v34 = vld [vmem:[%s4374_s23 + $0x56] sm:$0xff] }
  0xf2   : > { %3813 = vmatmul.msk.f32.gmra.mxu1 %vm359_vm1, %v1376_v40  ;;  %v4712_v5 = vadd.f32 %v1087_v28, %v1005_v41  ;;  %v1497_v28 = vld [vmem:[%s4624_s30 + $0x41] sm:$0xff]  ;;  %3933 = vmatpush.msk.msra.mxu2 %vm396_vm0, %v3932_v33  ;;  %v1382_v31 = vld [vmem:[%s4624_s30 + $0x58] sm:$0xff] }
  0xf3   : > { %v736_v6 = vpop.f32.mrf.mxu3  ;;  %v1844_v33 = vld [vmem:[%s4624_s30 + $0x13] sm:$0xff] }
  0xf4   : > { %v1090_v43 = vpop.f32.mrf.mxu2  ;;  %v770_v44 = vadd.f32 %v736_v6, %v652_v3  ;;  %v1144_v3 = vld [vmem:[%s4374_s23 + $0x5d] sm:$0xff]  ;;  %v1498_v6 = vld [vmem:[%s4624_s30 + $0x49] sm:$0xff] }
  0xf5   : > { %v857_v53 = vpop.f32.mrf.mxu0 }
  0xf6   : > { %v888_v50 = vadd.f32 %v854_v35, %v770_v44  ;;  %v1379_v35 = vld [vmem:[%s4624_s30 + $0x40] sm:$0xff] }
  0xf7   : > { %v975_v54 = vpop.f32.mrf.mxu1 }
  0xf8   : > { %v1006_v59 = vadd.f32 %v972_v36, %v888_v50  ;;  %3786 = vmatmul.msk.f32.gmra.mxu3 %vm359_vm1, %v1141_v45  ;;  %3800 = vmatmul.msk.f32.gmra.mxu0 %vm359_vm1, %v1259_v57  ;;  %v1380_v50 = vld [vmem:[%s4624_s30 + $0x48] sm:$0xff]  ;;  %v3918_v57 = vld [vmem:[%s5469_s3 + $0x44] sm:$0xf] }
  0xf9   : > { %3828 = vmatmul.msk.f32.gmra.mxu2 %vm359_vm1, %v1495_v48  ;;  %3919 = vmatpush.msk.msra.mxu1 %vm396_vm0, %v3918_v57 }
  0xfa   : > { %3814 = vmatmul.msk.f32.gmra.mxu1 %vm359_vm1, %v1377_v58  ;;  %v4725_v13 = vadd.f32 %v1090_v43, %v1006_v59  ;;  %v525_v43 = vadd.f32 %v4632_v38, %v4630_v37  ;;  %v3904_v37 = vld [vmem:[%s5469_s3 + $0x40] sm:$0xf] }
  0xfb   : > { %v739_v14 = vpop.f32.mrf.mxu3  ;;  %3905 = vmatpush.msk.msra.mxu0 %vm396_vm0, %v3904_v37 }
  0xfc   : > { %v1093_v62 = vpop.f32.mrf.mxu2  ;;  %v771_v1 = vadd.f32 %v739_v14, %v653_v10  ;;  %v656_v38 = vadd.f32 %v4640_v42, %v525_v43  ;;  %v1145_v14 = vld [vmem:[%s4374_s23 + $0x65] sm:$0xff] }
  0xfd   : > { %v860_v16 = vpop.f32.mrf.mxu0 }
  0xfe   : > { %v889_v15 = vadd.f32 %v857_v53, %v771_v1  ;;  %v528_v1 = vadd.f32 %v4646_v47, %v4644_v46 }
  0xff   : > { %v978_v17 = vpop.f32.mrf.mxu1 }
 0x100   : > { %v1007_v23 = vadd.f32 %v975_v54, %v889_v15  ;;  %3787 = vmatmul.msk.f32.gmra.mxu3 %vm359_vm1, %v1142_v7  ;;  %3801 = vmatmul.msk.f32.gmra.mxu0 %vm359_vm1, %v1260_v18  ;;  %v1381_v15 = vld [vmem:[%s4624_s30 + $0x50] sm:$0xff]  ;;  %v657_v46 = vadd.f32 %v4654_v51, %v528_v1  ;;  %v1845_v1 = vld [vmem:[%s4624_s30 + $0x1b] sm:$0xff] }
 0x101   : > { %3829 = vmatmul.msk.f32.gmra.mxu2 %vm359_vm1, %v1496_v8 }
 0x102   : > { %3815 = vmatmul.msk.f32.gmra.mxu1 %vm359_vm1, %v1378_v20  ;;  %v4738_v21 = vadd.f32 %v1093_v62, %v1007_v23  ;;  %v1499_v62 = vld [vmem:[%s4624_s30 + $0x51] sm:$0xff] }
 0x103   : > { %v742_v22 = vpop.f32.mrf.mxu3  ;;  %v1146_v23 = vld [vmem:[%s4374_s23 + $0x6d] sm:$0xff] }
 0x104   : > { %v1096_v24 = vpop.f32.mrf.mxu2  ;;  %v772_v26 = vadd.f32 %v742_v22, %v654_v19  ;;  %v1500_v19 = vld [vmem:[%s4624_s30 + $0x59] sm:$0xff]  ;;  %v531_v22 = vadd.f32 %v4662_v56, %v4660_v55 }
 0x105   : > { %v863_v0 = vpop.f32.mrf.mxu0 }
 0x106   : > { %v890_v63 = vadd.f32 %v860_v16, %v772_v26  ;;  %v658_v51 = vadd.f32 %v4670_v60, %v531_v22 }
 0x107   : > { %v981_v32 = vpop.f32.mrf.mxu1 }
 0x108   : > { %v1008_v36 = vadd.f32 %v978_v17, %v890_v63  ;;  %3788 = vmatmul.msk.f32.gmra.mxu3 %vm359_vm1, %v1143_v27  ;;  %3802 = vmatmul.msk.f32.gmra.mxu0 %vm359_vm1, %v1261_v34  ;;  %v1607_v34 = vld [vmem:[%s4624_s30 + $0x2] sm:$0xff] }
 0x109   : > { %3830 = vmatmul.msk.f32.gmra.mxu2 %vm359_vm1, %v1497_v28  ;;  %v1264_v28 = vld [vmem:[%s4374_s23 + $0x6e] sm:$0xff]  ;;  %s3680_s23 = sshll.u32 %s324_s14, 3 }
 0x10a   : > { %3816 = vmatmul.msk.f32.gmra.mxu1 %vm359_vm1, %v1379_v35  ;;  %v4754_v30 = vadd.f32 %v1096_v24, %v1008_v36  ;;  %v1961_v35 = vld [vmem:[%s4624_s30 + $0xc] sm:$0xff]  ;;  %v534_v36 = vadd.f32 %v4678_v4, %v4676_v2  ;;  %s4984_s27 = scalar_lea.vmem %s5468_s2, %s3680_s23 }
 0x10b   : > { %v745_v39 = vpop.f32.mrf.mxu3 }
 0x10c   : > { %v1099_v40 = vpop.f32.mrf.mxu2  ;;  %v773_v41 = vadd.f32 %v745_v39, %v655_v29  ;;  %v659_v60 = vadd.f32 %v4686_v11, %v534_v36 }
 0x10d   : > { %v866_v45 = vpop.f32.mrf.mxu0 }
 0x10e   : > { %v891_v44 = vadd.f32 %v863_v0, %v773_v41  ;;  %v1843_v41 = vld [vmem:[%s4624_s30 + $0xb] sm:$0xff] }
 0x10f   : > { %v984_v48 = vpop.f32.mrf.mxu1 }
 0x110   : > { %v1009_v53 = vadd.f32 %v981_v32, %v891_v44  ;;  %3789 = vmatmul.msk.f32.gmra.mxu3 %vm359_vm1, %v1144_v3  ;;  %3803 = vmatmul.msk.f32.gmra.mxu0 %vm359_vm1, %v1262_v49  ;;  %v4822_v44 = vld [vmem:[%s4624_s30 + $0x14] sm:$0xff] }
 0x111   : > { %3831 = vmatmul.msk.f32.gmra.mxu2 %vm359_vm1, %v1498_v6 }
 0x112   : > { %3817 = vmatmul.msk.f32.gmra.mxu1 %vm359_vm1, %v1380_v50  ;;  %v4775_v54 = vadd.f32 %v1099_v40, %v1009_v53  ;;  %v1608_v40 = vld [vmem:[%s4624_s30 + $0xa] sm:$0xff]  ;;  %v1609_v50 = vld [vmem:[%s4624_s30 + $0x12] sm:$0xff] }
 0x113   : > { %v748_v58 = vpop.f32.mrf.mxu3 }
 0x114   : > { %v1102_v59 = vpop.f32.mrf.mxu2  ;;  %v774_v10 = vadd.f32 %v748_v58, %v656_v38  ;;  %v4835_v58 = vld [vmem:[%s4624_s30 + $0x1c] sm:$0xff] }
 0x115   : > { %v869_v7 = vpop.f32.mrf.mxu0 }
 0x116   : > { %v892_v42 = vadd.f32 %v866_v45, %v774_v10 }
 0x117   : > { %v987_v8 = vpop.f32.mrf.mxu1 }
 0x118   : > { %v1010_v16 = vadd.f32 %v984_v48, %v892_v42  ;;  %3790 = vmatmul.msk.f32.gmra.mxu3 %vm359_vm1, %v1145_v14  ;;  %3804 = vmatmul.msk.f32.gmra.mxu0 %vm359_vm1, %v1263_v9 }
 0x119   : > { %3832 = vmatmul.msk.f32.gmra.mxu2 %vm359_vm1, %v1499_v62  ;;  %v1610_v62 = vld [vmem:[%s4624_s30 + $0x1a] sm:$0xff] }
 0x11a   : > { %3818 = vmatmul.msk.f32.gmra.mxu1 %vm359_vm1, %v1381_v15  ;;  %v4793_v47 = vadd.f32 %v1102_v59, %v1010_v16  ;;  %v4848_v15 = vld [vmem:[%s4624_s30 + $0x24] sm:$0xff] }
 0x11b   : > { %v751_v17 = vpop.f32.mrf.mxu3 }
 0x11c   : > { %v1105_v18 = vpop.f32.mrf.mxu2  ;;  %v775_v20 = vadd.f32 %v751_v17, %v657_v46 }
 0x11d   : > { %v872_v26 = vpop.f32.mrf.mxu0 }
 0x11e   : > { %v893_v24 = vadd.f32 %v869_v7, %v775_v20  ;;  %v1846_v20 = vld [vmem:[%s4624_s30 + $0x23] sm:$0xff] }
 0x11f   : > { %v990_v27 = vpop.f32.mrf.mxu1 }
 0x120   : > { %v1011_v63 = vadd.f32 %v987_v8, %v893_v24  ;;  %3791 = vmatmul.msk.f32.gmra.mxu3 %vm359_vm1, %v1146_v23  ;;  %3805 = vmatmul.msk.f32.gmra.mxu0 %vm359_vm1, %v1264_v28 }
 0x121   : > { %3833 = vmatmul.msk.f32.gmra.mxu2 %vm359_vm1, %v1500_v19 }
 0x122   : > { %3819 = vmatmul.msk.f32.gmra.mxu1 %vm359_vm1, %v1382_v31  ;;  %v4806_v55 = vadd.f32 %v1105_v18, %v1011_v63  ;;  %v1611_v18 = vld [vmem:[%s4624_s30 + $0x22] sm:$0xff]  ;;  %v1612_v63 = vld [vmem:[%s4624_s30 + $0x2a] sm:$0xff] }
 0x123   : > { %v754_v56 = vpop.f32.mrf.mxu3 }
 0x124   : > { %v1108_v0 = vpop.f32.mrf.mxu2  ;;  %v776_v32 = vadd.f32 %v754_v56, %v658_v51  ;;  %v1847_v51 = vld [vmem:[%s4624_s30 + $0x2b] sm:$0xff] }
 0x125   : > { %v875_v29 = vpop.f32.mrf.mxu0 }
 0x126   : > { %v894_v25 = vadd.f32 %v872_v26, %v776_v32  ;;  %v4861_v26 = vld [vmem:[%s4624_s30 + $0x2c] sm:$0xff] }
 0x127   : > { %v993_v39 = vpop.f32.mrf.mxu1 }
 0x128   : > { %v1012_v3 = vadd.f32 %v990_v27, %v894_v25  ;;  %3836 = vmatmul.msk.f32.vlgmr.msrb.gmra.mxu3 %vm359_vm1, %v1607_v34  ;;  %3850 = vmatmul.msk.f32.vlgmr.msrb.gmra.mxu0 %vm359_vm1, %v1608_v40 }
 0x129   : > { %3878 = vmatmul.msk.f32.vlgmr.msrb.gmra.mxu2 %vm359_vm1, %v1961_v35  ;;  %v4874_v35 = vld [vmem:[%s4624_s30 + $0x34] sm:$0xff] }
 0x12a   : > { %3864 = vmatmul.msk.f32.vlgmr.msrb.gmra.mxu1 %vm359_vm1, %v1843_v41  ;;  %v4819_v2 = vadd.f32 %v1108_v0, %v1012_v3 }
 0x12b   : > { %v757_v4 = vpop.f32.mrf.mxu3 }
 0x12c   : > { %v1111_v6 = vpop.f32.mrf.mxu2  ;;  %v777_v43 = vadd.f32 %v757_v4, %v659_v60 }
 0x12d   : > { %v878_v48 = vpop.f32.mrf.mxu0 }
 0x12e   : > { %v895_v45 = vadd.f32 %v875_v29, %v777_v43 }
 0x12f   : > { %v996_v49 = vpop.f32.mrf.mxu1 }
 0x130   : > { %v1013_v53 = vadd.f32 %v993_v39, %v895_v45  ;;  %3837 = vmatmul.msk.f32.gmra.mxu3 %vm359_vm1, %v1608_v40  ;;  %3851 = vmatmul.msk.f32.gmra.mxu0 %vm359_vm1, %v1609_v50  ;;  %v1613_v39 = vld [vmem:[%s4624_s30 + $0x32] sm:$0xff] }
 0x131   : > { %3879 = vmatmul.msk.f32.gmra.mxu2 %vm359_vm1, %v4822_v44  ;;  %v1848_v40 = vld [vmem:[%s4624_s30 + $0x33] sm:$0xff] }
 0x132   : > { %3865 = vmatmul.msk.f32.gmra.mxu1 %vm359_vm1, %v1844_v33  ;;  %v4831_v11 = vadd.f32 %v1111_v6, %v1013_v53  ;;  %v4887_v6 = vld [vmem:[%s4624_s30 + $0x3c] sm:$0xff] }
 0x133   : > { %v760_v37 = vpop.f32.mrf.mxu3 }
 0x134   : > { %v1114_v38 = vpop.f32.mrf.mxu2  ;;  %v778_v57 = vadd.f32 %v760_v37, %v4656_v52 }
 0x135   : > { %v881_v10 = vpop.f32.mrf.mxu0 }
 0x136   : > { %v896_v59 = vadd.f32 %v878_v48, %v778_v57  ;;  %v4900_v57 = vld [vmem:[%s4624_s30 + $0x44] sm:$0xff] }
 0x137   : > { %v999_v14 = vpop.f32.mrf.mxu1 }
 0x138   : > { %v1014_v42 = vadd.f32 %v996_v49, %v896_v59  ;;  %3838 = vmatmul.msk.f32.gmra.mxu3 %vm359_vm1, %v1609_v50  ;;  %3852 = vmatmul.msk.f32.gmra.mxu0 %vm359_vm1, %v1610_v62  ;;  %v1614_v49 = vld [vmem:[%s4624_s30 + $0x3a] sm:$0xff] }
 0x139   : > { %3880 = vmatmul.msk.f32.gmra.mxu2 %vm359_vm1, %v4835_v58  ;;  %v1849_v50 = vld [vmem:[%s4624_s30 + $0x3b] sm:$0xff] }
 0x13a   : > { %3866 = vmatmul.msk.f32.gmra.mxu1 %vm359_vm1, %v1845_v1  ;;  %v4844_v52 = vadd.f32 %v1114_v38, %v1014_v42  ;;  %v1850_v1 = vld [vmem:[%s4624_s30 + $0x43] sm:$0xff] }
 0x13b   : > { %v763_v7 = vpop.f32.mrf.mxu3 }
 0x13c   : > { %v1117_v8 = vpop.f32.mrf.mxu2  ;;  %v779_v9 = vadd.f32 %v763_v7, %v4672_v61 }
 0x13d   : > { %v884_v46 = vpop.f32.mrf.mxu0 }
 0x13e   : > { %v897_v16 = vadd.f32 %v881_v10, %v779_v9 }
 0x13f   : > { %v1002_v17 = vpop.f32.mrf.mxu1 }
 0x140   : > { %v1015_v23 = vadd.f32 %v999_v14, %v897_v16  ;;  %3839 = vmatmul.msk.f32.gmra.mxu3 %vm359_vm1, %v1610_v62  ;;  %3853 = vmatmul.msk.f32.gmra.mxu0 %vm359_vm1, %v1611_v18  ;;  %v1615_v62 = vld [vmem:[%s4624_s30 + $0x42] sm:$0xff]  ;;  %v4913_v16 = vld [vmem:[%s4624_s30 + $0x4c] sm:$0xff] }
 0x141   : > { %3881 = vmatmul.msk.f32.gmra.mxu2 %vm359_vm1, %v4848_v15 }
 0x142   : > { %3867 = vmatmul.msk.f32.gmra.mxu1 %vm359_vm1, %v1846_v20  ;;  %v4857_v61 = vadd.f32 %v1117_v8, %v1015_v23  ;;  %v1616_v20 = vld [vmem:[%s4624_s30 + $0x4a] sm:$0xff] }
 0x143   : > { %v766_v19 = vpop.f32.mrf.mxu3  ;;  %v1851_v23 = vld [vmem:[%s4624_s30 + $0x4b] sm:$0xff] }
 0x144   : > { %v1120_v22 = vpop.f32.mrf.mxu2  ;;  %v780_v24 = vadd.f32 %v766_v19, %v4688_v12 }
 0x145   : > { %v1323_v28 = vpop.f32.mrf.mxu0 }
 0x146   : > { %v898_v27 = vadd.f32 %v884_v46, %v780_v24 }
 0x147   : > { %v1441_v31 = vpop.f32.mrf.mxu1 }
 0x148   : > { %v1016_v56 = vadd.f32 %v1002_v17, %v898_v27  ;;  %3840 = vmatmul.msk.f32.gmra.mxu3 %vm359_vm1, %v1611_v18  ;;  %3854 = vmatmul.msk.f32.gmra.mxu0 %vm359_vm1, %v1612_v63 }
 0x149   : > { %3882 = vmatmul.msk.f32.gmra.mxu2 %vm359_vm1, %v4861_v26 }
 0x14a   : > { %3868 = vmatmul.msk.f32.gmra.mxu1 %vm359_vm1, %v1847_v51  ;;  %v4870_v12 = vadd.f32 %v1120_v22, %v1016_v56 }
 0x14b   : > { %v1205_v0 = vpop.f32.mrf.mxu3 }
 0x14c   : > { %v1559_v32 = vpop.f32.mrf.mxu2  ;;  %v1241_v34 = vadd.f32 %v1205_v0, %v4712_v5  ;;  %v1617_v0 = vld [vmem:[%s4624_s30 + $0x52] sm:$0xff] }
 0x14d   : > { %v1326_v25 = vpop.f32.mrf.mxu0 }
 0x14e   : > { %v1359_v36 = vadd.f32 %v1323_v28, %v1241_v34  ;;  %v3988_v34 = vld [vmem:[%s5469_s3 + $0x58] sm:$0xf] }
 0x14f   : > { %v1444_v29 = vpop.f32.mrf.mxu1  ;;  %3989 = vmatpush.msk.msrb.mxu2 %vm396_vm0, %v3988_v34 }
 0x150   : > { %v1477_v41 = vadd.f32 %v1441_v31, %v1359_v36  ;;  %3841 = vmatmul.msk.f32.gmra.mxu3 %vm359_vm1, %v1612_v63  ;;  %3855 = vmatmul.msk.f32.gmra.mxu0 %vm359_vm1, %v1613_v39  ;;  %v4930_v31 = vld [vmem:[%s4624_s30 + $0x54] sm:$0xff] }
 0x151   : > { %3883 = vmatmul.msk.f32.gmra.mxu2 %vm359_vm1, %v4874_v35 }
 0x152   : > { %3869 = vmatmul.msk.f32.gmra.mxu1 %vm359_vm1, %v1848_v40  ;;  %v4883_v5 = vadd.f32 %v1559_v32, %v1477_v41  ;;  %v1852_v32 = vld [vmem:[%s4624_s30 + $0x53] sm:$0xff] }
 0x153   : > { %v1208_v3 = vpop.f32.mrf.mxu3 }
 0x154   : > { %v1562_v60 = vpop.f32.mrf.mxu2  ;;  %v1242_v4 = vadd.f32 %v1208_v3, %v4725_v13  ;;  %v4956_v3 = vld [vmem:[%s4624_s30 + $0x5c] sm:$0xff] }
 0x155   : > { %v1329_v45 = vpop.f32.mrf.mxu0 }
 0x156   : > { %v1360_v43 = vadd.f32 %v1326_v25, %v1242_v4 }
 0x157   : > { %v1447_v48 = vpop.f32.mrf.mxu1 }
 0x158   : > { %v1478_v33 = vadd.f32 %v1444_v29, %v1360_v43  ;;  %3842 = vmatmul.msk.f32.gmra.mxu3 %vm359_vm1, %v1613_v39  ;;  %3856 = vmatmul.msk.f32.gmra.mxu0 %vm359_vm1, %v1614_v49  ;;  %v3974_v29 = vld [vmem:[%s5469_s3 + $0x54] sm:$0xf] }
 0x159   : > { %3884 = vmatmul.msk.f32.gmra.mxu2 %vm359_vm1, %v4887_v6  ;;  %3975 = vmatpush.msk.msrb.mxu1 %vm396_vm0, %v3974_v29  ;;  %v2435_v29 = vld [vmem:[%s4984_s27 + $0x10] sm:$0xff] }
 0x15a   : > { %3870 = vmatmul.msk.f32.gmra.mxu1 %vm359_vm1, %v1849_v50  ;;  %v4896_v13 = vadd.f32 %v1562_v60, %v1478_v33 }
 0x15b   : > { %v1211_v53 = vpop.f32.mrf.mxu3 }
 0x15c   : > { %v1565_v37 = vpop.f32.mrf.mxu2  ;;  %v1243_v38 = vadd.f32 %v1211_v53, %v4738_v21 }
 0x15d   : > { %v1332_v10 = vpop.f32.mrf.mxu0 }
 0x15e   : > { %v1361_v59 = vadd.f32 %v1329_v45, %v1243_v38  ;;  %v1618_v45 = vld [vmem:[%s4624_s30 + $0x5a] sm:$0xff] }
 0x15f   : > { %v1450_v14 = vpop.f32.mrf.mxu1 }
 0x160   : > { %v1479_v42 = vadd.f32 %v1447_v48, %v1361_v59  ;;  %3843 = vmatmul.msk.f32.gmra.mxu3 %vm359_vm1, %v1614_v49  ;;  %3857 = vmatmul.msk.f32.gmra.mxu0 %vm359_vm1, %v1615_v62  ;;  %v1853_v48 = vld [vmem:[%s4624_s30 + $0x5b] sm:$0xff] }
 0x161   : > { %3885 = vmatmul.msk.f32.gmra.mxu2 %vm359_vm1, %v4900_v57 }
 0x162   : > { %3871 = vmatmul.msk.f32.gmra.mxu1 %vm359_vm1, %v1850_v1  ;;  %v4909_v21 = vadd.f32 %v1565_v37, %v1479_v42  ;;  %v4970_v37 = vld [vmem:[%s4624_s30 + $0x64] sm:$0xff] }
 0x163   : > { %v1214_v7 = vpop.f32.mrf.mxu3 }
 0x164   : > { %v1568_v8 = vpop.f32.mrf.mxu2  ;;  %v1244_v9 = vadd.f32 %v1214_v7, %v4754_v30  ;;  %v3946_v30 = vld [vmem:[%s5469_s3 + $0x4c] sm:$0xf] }
 0x165   : > { %v1335_v17 = vpop.f32.mrf.mxu0  ;;  %3947 = vmatpush.msk.msrb.mxu3 %vm396_vm0, %v3946_v30 }
 0x166   : > { %v1362_v46 = vadd.f32 %v1332_v10, %v1244_v9  ;;  %v2433_v9 = vld [vmem:[%s4984_s27] sm:$0xff] }
 0x167   : > { %v1453_v18 = vpop.f32.mrf.mxu1 }
 0x168   : > { %v1480_v19 = vadd.f32 %v1450_v14, %v1362_v46  ;;  %3844 = vmatmul.msk.f32.gmra.mxu3 %vm359_vm1, %v1615_v62  ;;  %3858 = vmatmul.msk.f32.gmra.mxu0 %vm359_vm1, %v1616_v20  ;;  %v1736_v14 = vld [vmem:[%s4624_s30 + $0x62] sm:$0xff] }
 0x169   : > { %3886 = vmatmul.msk.f32.gmra.mxu2 %vm359_vm1, %v4913_v16  ;;  %v1854_v62 = vld [vmem:[%s4624_s30 + $0x63] sm:$0xff] }
 0x16a   : > { %3872 = vmatmul.msk.f32.gmra.mxu1 %vm359_vm1, %v1851_v23  ;;  %v4925_v22 = vadd.f32 %v1568_v8, %v1480_v19  ;;  %v2315_v23 = vld [vmem:[%s4624_s30 + $0x16] sm:$0xff] }
 0x16b   : > { %v1217_v24 = vpop.f32.mrf.mxu3 }
 0x16c   : > { %v1571_v27 = vpop.f32.mrf.mxu2  ;;  %v1245_v28 = vadd.f32 %v1217_v24, %v4775_v54  ;;  %v3960_v54 = vld [vmem:[%s5469_s3 + $0x50] sm:$0xf] }
 0x16d   : > { %v1338_v51 = vpop.f32.mrf.mxu0  ;;  %3961 = vmatpush.msk.msrb.mxu0 %vm396_vm0, %v3960_v54 }
 0x16e   : > { %v1363_v63 = vadd.f32 %v1335_v17, %v1245_v28  ;;  %v2434_v28 = vld [vmem:[%s4984_s27 + $0x8] sm:$0xff] }
 0x16f   : > { %v1456_v56 = vpop.f32.mrf.mxu1 }
 0x170   : > { %v1481_v36 = vadd.f32 %v1453_v18, %v1363_v63  ;;  %3845 = vmatmul.msk.f32.gmra.mxu3 %vm359_vm1, %v1616_v20  ;;  %3859 = vmatmul.msk.f32.gmra.mxu0 %vm359_vm1, %v1617_v0  ;;  %v2197_v20 = vld [vmem:[%s4624_s30 + $0x15] sm:$0xff] }
 0x171   : > { %3887 = vmatmul.msk.f32.gmra.mxu2 %vm359_vm1, %v4930_v31 }
 0x172   : > { %3873 = vmatmul.msk.f32.gmra.mxu1 %vm359_vm1, %v1852_v32  ;;  %v4947_v25 = vadd.f32 %v1571_v27, %v1481_v36 }
 0x173   : > { %v1220_v39 = vpop.f32.mrf.mxu3 }
 0x174   : > { %v1574_v40 = vpop.f32.mrf.mxu2  ;;  %v1246_v41 = vadd.f32 %v1220_v39, %v4793_v47 }
 0x175   : > { %v1341_v4 = vpop.f32.mrf.mxu0 }
 0x176   : > { %v1364_v60 = vadd.f32 %v1338_v51, %v1246_v41 }
 0x177   : > { %v1459_v43 = vpop.f32.mrf.mxu1 }
 0x178   : > { %v1482_v49 = vadd.f32 %v1456_v56, %v1364_v60  ;;  %3846 = vmatmul.msk.f32.gmra.mxu3 %vm359_vm1, %v1617_v0  ;;  %3860 = vmatmul.msk.f32.gmra.mxu0 %vm359_vm1, %v1618_v45  ;;  %v2198_v0 = vld [vmem:[%s4624_s30 + $0x1d] sm:$0xff]  ;;  %v2199_v60 = vld [vmem:[%s4624_s30 + $0x25] sm:$0xff] }
 0x179   : > { %3888 = vmatmul.msk.f32.gmra.mxu2 %vm359_vm1, %v4956_v3 }
 0x17a   : > { %3874 = vmatmul.msk.f32.gmra.mxu1 %vm359_vm1, %v1853_v48  ;;  %v4965_v47 = vadd.f32 %v1574_v40, %v1482_v49  ;;  %v2436_v49 = vld [vmem:[%s4984_s27 + $0x18] sm:$0xff] }
 0x17b   : > { %v1223_v50 = vpop.f32.mrf.mxu3 }
 0x17c   : > { %v1577_v33 = vpop.f32.mrf.mxu2  ;;  %v1247_v53 = vadd.f32 %v1223_v50, %v4806_v55 }
 0x17d   : > { %v1344_v59 = vpop.f32.mrf.mxu0 }
 0x17e   : > { %v1365_v38 = vadd.f32 %v1341_v4, %v1247_v53 }
 0x17f   : > { %v1462_v10 = vpop.f32.mrf.mxu1 }
 0x180   : > { %v1483_v1 = vadd.f32 %v1459_v43, %v1365_v38  ;;  %3847 = vmatmul.msk.f32.gmra.mxu3 %vm359_vm1, %v1618_v45  ;;  %3861 = vmatmul.msk.f32.gmra.mxu0 %vm359_vm1, %v1736_v14  ;;  %v2200_v38 = vld [vmem:[%s4624_s30 + $0x2d] sm:$0xff] }
 0x181   : > { %3889 = vmatmul.msk.f32.gmra.mxu2 %vm359_vm1, %v4970_v37 }
 0x182   : > { %3875 = vmatmul.msk.f32.gmra.mxu1 %vm359_vm1, %v1854_v62  ;;  %v4979_v55 = vadd.f32 %v1577_v33, %v1483_v1  ;;  %v2437_v1 = vld [vmem:[%s4984_s27 + $0x20] sm:$0xff] }
 0x183   : > { %v1226_v42 = vpop.f32.mrf.mxu3 }
 0x184   : > { %v1580_v7 = vpop.f32.mrf.mxu2  ;;  %v1248_v8 = vadd.f32 %v1226_v42, %v4819_v2 }
 0x185   : > { %v1347_v17 = vpop.f32.mrf.mxu0 }
 0x186   : > { %v1366_v46 = vadd.f32 %v1344_v59, %v1248_v8 }
 0x187   : > { %v1465_v18 = vpop.f32.mrf.mxu1 }
 0x188   : > { %v1484_v19 = vadd.f32 %v1462_v10, %v1366_v46  ;;  %3892 = vmatmul.msk.f32.vlgmr.msra.gmra.mxu3 %vm359_vm1, %v4822_v44  ;;  %3906 = vmatmul.msk.f32.vlgmr.msra.gmra.mxu0 %vm359_vm1, %v2197_v20  ;;  %v2316_v44 = vld [vmem:[%s4624_s30 + $0x1e] sm:$0xff] }
 0x189   : > { %3934 = vmatmul.msk.f32.vlgmr.msra.gmra.mxu2 %vm359_vm1, %v2433_v9  ;;  %v2201_v9 = vld [vmem:[%s4624_s30 + $0x35] sm:$0xff] }
 0x18a   : > { %3920 = vmatmul.msk.f32.vlgmr.msra.gmra.mxu1 %vm359_vm1, %v2315_v23  ;;  %v4995_v2 = vadd.f32 %v1580_v7, %v1484_v19  ;;  %v2438_v23 = vld [vmem:[%s4984_s27 + $0x28] sm:$0xff] }
 0x18b   : > { %v1229_v30 = vpop.f32.mrf.mxu3 }
 0x18c   : > { %v1583_v24 = vpop.f32.mrf.mxu2  ;;  %v1249_v27 = vadd.f32 %v1229_v30, %v4831_v11 }
 0x18d   : > { %v1350_v51 = vpop.f32.mrf.mxu0 }
 0x18e   : > { %v1367_v63 = vadd.f32 %v1347_v17, %v1249_v27  ;;  %v2202_v27 = vld [vmem:[%s4624_s30 + $0x3d] sm:$0xff] }
 0x18f   : > { %v1468_v56 = vpop.f32.mrf.mxu1 }
 0x190   : > { %v1485_v32 = vadd.f32 %v1465_v18, %v1367_v63  ;;  %3893 = vmatmul.msk.f32.gmra.mxu3 %vm359_vm1, %v4835_v58  ;;  %3907 = vmatmul.msk.f32.gmra.mxu0 %vm359_vm1, %v2198_v0  ;;  %v2317_v58 = vld [vmem:[%s4624_s30 + $0x26] sm:$0xff]  ;;  %v2439_v0 = vld [vmem:[%s4984_s27 + $0x30] sm:$0xff] }
 0x191   : > { %3935 = vmatmul.msk.f32.gmra.mxu2 %vm359_vm1, %v2434_v28 }
 0x192   : > { %3921 = vmatmul.msk.f32.gmra.mxu1 %vm359_vm1, %v2316_v44  ;;  %v5006_v11 = vadd.f32 %v1583_v24, %v1485_v32 }
 0x193   : > { %v1232_v34 = vpop.f32.mrf.mxu3 }
 0x194   : > { %v1586_v36 = vpop.f32.mrf.mxu2  ;;  %v1250_v54 = vadd.f32 %v1232_v34, %v4844_v52 }
 0x195   : > { %v1353_v40 = vpop.f32.mrf.mxu0 }
 0x196   : > { %v1368_v39 = vadd.f32 %v1350_v51, %v1250_v54 }
 0x197   : > { %v1471_v41 = vpop.f32.mrf.mxu1 }
 0x198   : > { %v1486_v4 = vadd.f32 %v1468_v56, %v1368_v39  ;;  %3894 = vmatmul.msk.f32.gmra.mxu3 %vm359_vm1, %v4848_v15  ;;  %3908 = vmatmul.msk.f32.gmra.mxu0 %vm359_vm1, %v2199_v60  ;;  %v2318_v15 = vld [vmem:[%s4624_s30 + $0x2e] sm:$0xff] }
 0x199   : > { %3936 = vmatmul.msk.f32.gmra.mxu2 %vm359_vm1, %v2435_v29 }
 0x19a   : > { %3922 = vmatmul.msk.f32.gmra.mxu1 %vm359_vm1, %v2317_v58  ;;  %v5017_v52 = vadd.f32 %v1586_v36, %v1486_v4  ;;  %v2203_v36 = vld [vmem:[%s4624_s30 + $0x45] sm:$0xff] }
 0x19b   : > { %v1235_v43 = vpop.f32.mrf.mxu3 }
 0x19c   : > { %v1589_v45 = vpop.f32.mrf.mxu2  ;;  %v1251_v48 = vadd.f32 %v1235_v43, %v4857_v61  ;;  %v2204_v43 = vld [vmem:[%s4624_s30 + $0x4d] sm:$0xff] }
 0x19d   : > { %v1356_v33 = vpop.f32.mrf.mxu0 }
 0x19e   : > { %v1369_v50 = vadd.f32 %v1353_v40, %v1251_v48 }
 0x19f   : > { %v1474_v53 = vpop.f32.mrf.mxu1 }
 0x1a0   : > { %v1487_v59 = vadd.f32 %v1471_v41, %v1369_v50  ;;  %3895 = vmatmul.msk.f32.gmra.mxu3 %vm359_vm1, %v4861_v26  ;;  %3909 = vmatmul.msk.f32.gmra.mxu0 %vm359_vm1, %v2200_v38  ;;  %v2319_v26 = vld [vmem:[%s4624_s30 + $0x36] sm:$0xff] }
 0x1a1   : > { %3937 = vmatmul.msk.f32.gmra.mxu2 %vm359_vm1, %v2436_v49  ;;  %v2440_v41 = vld [vmem:[%s4984_s27 + $0x38] sm:$0xff] }
 0x1a2   : > { %3923 = vmatmul.msk.f32.gmra.mxu1 %vm359_vm1, %v2318_v15  ;;  %v5028_v61 = vadd.f32 %v1589_v45, %v1487_v59  ;;  %v2205_v59 = vld [vmem:[%s4624_s30 + $0x55] sm:$0xff] }
 0x1a3   : > { %v1238_v10 = vpop.f32.mrf.mxu3 }
 0x1a4   : > { %v1592_v14 = vpop.f32.mrf.mxu2  ;;  %v1252_v62 = vadd.f32 %v1238_v10, %v4870_v12  ;;  %v2323_v10 = vld [vmem:[%s4624_s30 + $0x56] sm:$0xff] }
 0x1a5   : > { %v1795_v7 = vpop.f32.mrf.mxu0 }
 0x1a6   : > { %v1370_v42 = vadd.f32 %v1356_v33, %v1252_v62  ;;  %v2441_v33 = vld [vmem:[%s4984_s27 + $0x40] sm:$0xff] }
 0x1a7   : > { %v1913_v8 = vpop.f32.mrf.mxu1 }
 0x1a8   : > { %v1488_v46 = vadd.f32 %v1474_v53, %v1370_v42  ;;  %3896 = vmatmul.msk.f32.gmra.mxu3 %vm359_vm1, %v4874_v35  ;;  %3910 = vmatmul.msk.f32.gmra.mxu0 %vm359_vm1, %v2201_v9  ;;  %v2320_v35 = vld [vmem:[%s4624_s30 + $0x3e] sm:$0xff] }
 0x1a9   : > { %3938 = vmatmul.msk.f32.gmra.mxu2 %vm359_vm1, %v2437_v1 }
 0x1aa   : > { %3924 = vmatmul.msk.f32.gmra.mxu1 %vm359_vm1, %v2319_v26  ;;  %v5039_v12 = vadd.f32 %v1592_v14, %v1488_v46  ;;  %v4002_v14 = vld [vmem:[%s5469_s3 + $0x5c] sm:$0xf] }
 0x1ab   : > { %v1677_v17 = vpop.f32.mrf.mxu3  ;;  %4003 = vmatpush.msk.msra.mxu3 %vm396_vm0, %v4002_v14  ;;  %v2206_v26 = vld [vmem:[%s4624_s30 + $0x5d] sm:$0xff] }
 0x1ac   : > { %v2031_v18 = vpop.f32.mrf.mxu2  ;;  %v1713_v20 = vadd.f32 %v1677_v17, %v4883_v5  ;;  %v2324_v46 = vld [vmem:[%s4624_s30 + $0x5e] sm:$0xff]  ;;  %v4044_v17 = vld [vmem:[%s5469_s3 + $0x68] sm:$0xf] }
 0x1ad   : > { %v1798_v30 = vpop.f32.mrf.mxu0  ;;  %4045 = vmatpush.msk.msra.mxu2 %vm396_vm0, %v4044_v17 }
 0x1ae   : > { %v1831_v19 = vadd.f32 %v1795_v7, %v1713_v20  ;;  %v2442_v7 = vld [vmem:[%s4984_s27 + $0x48] sm:$0xff] }
 0x1af   : > { %v1916_v24 = vpop.f32.mrf.mxu1 }
 0x1b0   : > { %v1949_v28 = vadd.f32 %v1913_v8, %v1831_v19  ;;  %3897 = vmatmul.msk.f32.gmra.mxu3 %vm359_vm1, %v4887_v6  ;;  %3911 = vmatmul.msk.f32.gmra.mxu0 %vm359_vm1, %v2202_v27  ;;  %v2321_v6 = vld [vmem:[%s4624_s30 + $0x46] sm:$0xff] }
 0x1b1   : > { %3939 = vmatmul.msk.f32.gmra.mxu2 %vm359_vm1, %v2438_v23 }
 0x1b2   : > { %3925 = vmatmul.msk.f32.gmra.mxu1 %vm359_vm1, %v2320_v35  ;;  %v5050_v5 = vadd.f32 %v2031_v18, %v1949_v28 }
 0x1b3   : > { %v1680_v63 = vpop.f32.mrf.mxu3 }
 0x1b4   : > { %v2034_v51 = vpop.f32.mrf.mxu2  ;;  %v1714_v56 = vadd.f32 %v1680_v63, %v4896_v13  ;;  %v2207_v63 = vld [vmem:[%s4624_s30 + $0x65] sm:$0xff] }
 0x1b5   : > { %v1801_v32 = vpop.f32.mrf.mxu0 }
 0x1b6   : > { %v1832_v44 = vadd.f32 %v1798_v30, %v1714_v56 }
 0x1b7   : > { %v1919_v34 = vpop.f32.mrf.mxu1 }
 0x1b8   : > { %v1950_v54 = vadd.f32 %v1916_v24, %v1832_v44  ;;  %3898 = vmatmul.msk.f32.gmra.mxu3 %vm359_vm1, %v4900_v57  ;;  %3912 = vmatmul.msk.f32.gmra.mxu0 %vm359_vm1, %v2203_v36  ;;  %v2322_v57 = vld [vmem:[%s4624_s30 + $0x4e] sm:$0xff]  ;;  %v2444_v36 = vld [vmem:[%s4984_s27 + $0x58] sm:$0xff] }
 0x1b9   : > { %3940 = vmatmul.msk.f32.gmra.mxu2 %vm359_vm1, %v2439_v0  ;;  %v2443_v24 = vld [vmem:[%s4984_s27 + $0x50] sm:$0xff] }
 0x1ba   : > { %3926 = vmatmul.msk.f32.gmra.mxu1 %vm359_vm1, %v2321_v6  ;;  %v5061_v13 = vadd.f32 %v2034_v51, %v1950_v54  ;;  %v2325_v51 = vld [vmem:[%s4624_s30 + $0x66] sm:$0xff] }
 0x1bb   : > { %v1683_v29 = vpop.f32.mrf.mxu3 }
 0x1bc   : > { %v2037_v39 = vpop.f32.mrf.mxu2  ;;  %v1715_v40 = vadd.f32 %v1683_v29, %v4909_v21 }
 0x1bd   : > { %v1804_v58 = vpop.f32.mrf.mxu0 }
 0x1be   : > { %v1833_v60 = vadd.f32 %v1801_v32, %v1715_v40 }
 0x1bf   : > { %v1922_v4 = vpop.f32.mrf.mxu1 }
 0x1c0   : > { %v1951_v45 = vadd.f32 %v1919_v34, %v1833_v60  ;;  %3899 = vmatmul.msk.f32.gmra.mxu3 %vm359_vm1, %v4913_v16  ;;  %3913 = vmatmul.msk.f32.gmra.mxu0 %vm359_vm1, %v2204_v43  ;;  %v2090_v34 = vld [vmem:[%s4624_s30 + $0x6c] sm:$0xff] }
 0x1c1   : > { %3941 = vmatmul.msk.f32.gmra.mxu2 %vm359_vm1, %v2440_v41  ;;  %v2905_v43 = vld [vmem:[%s4984_s27 + $0xb] sm:$0xff] }
 0x1c2   : > { %3927 = vmatmul.msk.f32.gmra.mxu1 %vm359_vm1, %v2322_v57  ;;  %v5072_v21 = vadd.f32 %v2037_v39, %v1951_v45  ;;  %v2326_v39 = vld [vmem:[%s4624_s30 + $0x6e] sm:$0xff] }
 0x1c3   : > { %v1686_v48 = vpop.f32.mrf.mxu3 }
 0x1c4   : > { %v2040_v49 = vpop.f32.mrf.mxu2  ;;  %v1716_v50 = vadd.f32 %v1686_v48, %v4925_v22 }
 0x1c5   : > { %v1807_v38 = vpop.f32.mrf.mxu0 }
 0x1c6   : > { %v1834_v53 = vadd.f32 %v1804_v58, %v1716_v50  ;;  %v2787_v50 = vld [vmem:[%s4984_s27 + $0xa] sm:$0xff] }
 0x1c7   : > { %v1925_v15 = vpop.f32.mrf.mxu1 }
 0x1c8   : > { %v1952_v16 = vadd.f32 %v1922_v4, %v1834_v53  ;;  %3900 = vmatmul.msk.f32.gmra.mxu3 %vm359_vm1, %v4930_v31  ;;  %3914 = vmatmul.msk.f32.gmra.mxu0 %vm359_vm1, %v2205_v59  ;;  %v2551_v4 = vld [vmem:[%s4984_s27 + $0x1] sm:$0xff]  ;;  %v2552_v59 = vld [vmem:[%s4984_s27 + $0x9] sm:$0xff] }
 0x1c9   : > { %3942 = vmatmul.msk.f32.gmra.mxu2 %vm359_vm1, %v2441_v33 }
 0x1ca   : > { %3928 = vmatmul.msk.f32.gmra.mxu1 %vm359_vm1, %v2323_v10  ;;  %v5086_v22 = vadd.f32 %v2040_v49, %v1952_v16  ;;  %v2669_v49 = vld [vmem:[%s4984_s27 + $0x2] sm:$0xff]  ;;  %v2906_v10 = vld [vmem:[%s4984_s27 + $0x13] sm:$0xff] }
 0x1cb   : > { %v1689_v62 = vpop.f32.mrf.mxu3 }
 0x1cc   : > { %v2043_v1 = vpop.f32.mrf.mxu2  ;;  %v1717_v42 = vadd.f32 %v1689_v62, %v4947_v25  ;;  %v4016_v25 = vld [vmem:[%s5469_s3 + $0x60] sm:$0xf] }
 0x1cd   : > { %v1810_v8 = vpop.f32.mrf.mxu0  ;;  %4017 = vmatpush.msk.msra.mxu0 %vm396_vm0, %v4016_v25  ;;  %v2789_v25 = vld [vmem:[%s4984_s27 + $0x1a] sm:$0xff] }
 0x1ce   : > { %v1835_v31 = vadd.f32 %v1807_v38, %v1717_v42 }
 0x1cf   : > { %v1928_v9 = vpop.f32.mrf.mxu1 }
 0x1d0   : > { %v1953_v18 = vadd.f32 %v1925_v15, %v1835_v31  ;;  %3901 = vmatmul.msk.f32.gmra.mxu3 %vm359_vm1, %v4956_v3  ;;  %3915 = vmatmul.msk.f32.gmra.mxu0 %vm359_vm1, %v2206_v26  ;;  %v4030_v3 = vld [vmem:[%s5469_s3 + $0x64] sm:$0xf]  ;;  %v2907_v26 = vld [vmem:[%s4984_s27 + $0x1b] sm:$0xff] }
 0x1d1   : > { %3943 = vmatmul.msk.f32.gmra.mxu2 %vm359_vm1, %v2442_v7  ;;  %4031 = vmatpush.msk.msra.mxu1 %vm396_vm0, %v4030_v3 }
 0x1d2   : > { %3929 = vmatmul.msk.f32.gmra.mxu1 %vm359_vm1, %v2324_v46  ;;  %v5105_v20 = vadd.f32 %v2043_v1, %v1953_v18  ;;  %v2788_v1 = vld [vmem:[%s4984_s27 + $0x12] sm:$0xff] }
 0x1d3   : > { %v1692_v23 = vpop.f32.mrf.mxu3 }
 0x1d4   : > { %v2046_v19 = vpop.f32.mrf.mxu2  ;;  %v1718_v30 = vadd.f32 %v1692_v23, %v4965_v47 }
 0x1d5   : > { %v1813_v35 = vpop.f32.mrf.mxu0 }
 0x1d6   : > { %v1836_v27 = vadd.f32 %v1810_v8, %v1718_v30 }
 0x1d7   : > { %v1931_v28 = vpop.f32.mrf.mxu1 }
 0x1d8   : > { %v1954_v56 = vadd.f32 %v1928_v9, %v1836_v27  ;;  %3902 = vmatmul.msk.f32.gmra.mxu3 %vm359_vm1, %v4970_v37  ;;  %3916 = vmatmul.msk.f32.gmra.mxu0 %vm359_vm1, %v2207_v63  ;;  %v2208_v37 = vld [vmem:[%s4624_s30 + $0x6d] sm:$0xff]  ;;  %v2908_v27 = vld [vmem:[%s4984_s27 + $0x23] sm:$0xff]  ;;  %s294_s30 = sand.u32 1, %s4214_s16  }
 0x1d9   : > { %3944 = vmatmul.msk.f32.gmra.mxu2 %vm359_vm1, %v2443_v24  ;;  %v2553_v9 = vld [vmem:[%s4984_s27 + $0x11] sm:$0xff]  ;;  %v2554_v24 = vld [vmem:[%s4984_s27 + $0x19] sm:$0xff]  ;;  %s4064_s23 = smul.u32 96, %s294_s30  ;;  %s3508_s12 = scalar_lea.sflag [#allocation3], %s294_s30 }
 0x1da   : > { %3930 = vmatmul.msk.f32.gmra.mxu1 %vm359_vm1, %v2325_v51  ;;  %v5121_v47 = vadd.f32 %v2046_v19, %v1954_v56  ;;  %v2790_v51 = vld [vmem:[%s4984_s27 + $0x22] sm:$0xff] }
 0x1db   : > { %v1695_v0 = vpop.f32.mrf.mxu3  ;;  %s5395_s9 = scalar_lea.vmem [#allocation2], %s4064_s23 }
 0x1dc   : > { %v2049_v44 = vpop.f32.mrf.mxu2  ;;  %v1719_v32 = vadd.f32 %v1695_v0, %v4979_v55  ;;  %s3523_s10 = sshll.u32 %s5395_s9, 4  ;;  %s3524_s10 = int_to_ptr.vmem [resolvable:$true] %s3523_s10 }
 0x1dd   : > { %v1816_v54 = vpop.f32.mrf.mxu0 }
 0x1de   : > { %v1837_v6 = vadd.f32 %v1813_v35, %v1719_v32 }
 0x1df   : > { %v1934_v29 = vpop.f32.mrf.mxu1 }
 0x1e0   : > { %v1955_v40 = vadd.f32 %v1931_v28, %v1837_v6  ;;  %3903 = vmatmul.msk.f32.gmra.mxu3 %vm359_vm1, %v2090_v34  ;;  %3917 = vmatmul.msk.f32.gmra.mxu0 %vm359_vm1, %v2208_v37  ;;  %v2555_v34 = vld [vmem:[%s4984_s27 + $0x21] sm:$0xff]  ;;  %v2791_v37 = vld [vmem:[%s4984_s27 + $0x2a] sm:$0xff] }
 0x1e1   : > { %3945 = vmatmul.msk.f32.gmra.mxu2 %vm359_vm1, %v2444_v36  ;;  %v2909_v36 = vld [vmem:[%s4984_s27 + $0x2b] sm:$0xff] }
 0x1e2   : > { %3931 = vmatmul.msk.f32.gmra.mxu1 %vm359_vm1, %v2326_v39  ;;  %v5132_v55 = vadd.f32 %v2049_v44, %v1955_v40 }
 0x1e3   : > { %v1698_v41 = vpop.f32.mrf.mxu3 }
 0x1e4   : > { %v2052_v60 = vpop.f32.mrf.mxu2  ;;  %v1720_v58 = vadd.f32 %v1698_v41, %v4995_v2 }
 0x1e5   : > { %v1819_v45 = vpop.f32.mrf.mxu0 }
 0x1e6   : > { %v1838_v57 = vadd.f32 %v1816_v54, %v1720_v58  ;;  %v2556_v58 = vld [vmem:[%s4984_s27 + $0x29] sm:$0xff] }
 0x1e7   : > { %v1937_v48 = vpop.f32.mrf.mxu1 }
 0x1e8   : > { %v1956_v33 = vadd.f32 %v1934_v29, %v1838_v57  ;;  %3948 = vmatmul.msk.f32.vlgmr.msrb.gmra.mxu3 %vm359_vm1, %v2551_v4  ;;  %3962 = vmatmul.msk.f32.vlgmr.msrb.gmra.mxu0 %vm359_vm1, %v2669_v49  ;;  %v2910_v4 = vld [vmem:[%s4984_s27 + $0x33] sm:$0xff] }
 0x1e9   : > { %3990 = vmatmul.msk.f32.vlgmr.msrb.gmra.mxu2 %vm359_vm1, %v2905_v43 }
 0x1ea   : > { %3976 = vmatmul.msk.f32.vlgmr.msrb.gmra.mxu1 %vm359_vm1, %v2787_v50  ;;  %v5143_v2 = vadd.f32 %v2052_v60, %v1956_v33 }
 0x1eb   : > { %v1701_v53 = vpop.f32.mrf.mxu3 }
 0x1ec   : > { %v2055_v38 = vpop.f32.mrf.mxu2  ;;  %v1721_v15 = vadd.f32 %v1701_v53, %v5006_v11 }
 0x1ed   : > { %v1822_v14 = vpop.f32.mrf.mxu0 }
 0x1ee   : > { %v1839_v16 = vadd.f32 %v1819_v45, %v1721_v15  ;;  %v2911_v15 = vld [vmem:[%s4984_s27 + $0x3b] sm:$0xff] }
 0x1ef   : > { %v1940_v62 = vpop.f32.mrf.mxu1 }
 0x1f0   : > { %v1957_v42 = vadd.f32 %v1937_v48, %v1839_v16  ;;  %3949 = vmatmul.msk.f32.gmra.mxu3 %vm359_vm1, %v2552_v59  ;;  %3963 = vmatmul.msk.f32.gmra.mxu0 %vm359_vm1, %v2787_v50  ;;  %v2792_v48 = vld [vmem:[%s4984_s27 + $0x32] sm:$0xff] }
 0x1f1   : > { %3991 = vmatmul.msk.f32.gmra.mxu2 %vm359_vm1, %v2906_v10 }
 0x1f2   : > { %3977 = vmatmul.msk.f32.gmra.mxu1 %vm359_vm1, %v2788_v1  ;;  %v5153_v7 = vadd.f32 %v2055_v38, %v1957_v42  ;;  %v2557_v38 = vld [vmem:[%s4984_s27 + $0x31] sm:$0xff] }
 0x1f3   : > { %v1704_v11 = vpop.f32.mrf.mxu3 }
 0x1f4   : > { %v2058_v31 = vpop.f32.mrf.mxu2  ;;  %v1722_v8 = vadd.f32 %v1704_v11, %v5017_v52 }
 0x1f5   : > { %v1825_v17 = vpop.f32.mrf.mxu0 }
 0x1f6   : > { %v1840_v46 = vadd.f32 %v1822_v14, %v1722_v8  ;;  %v2793_v14 = vld [vmem:[%s4984_s27 + $0x3a] sm:$0xff]  ;;  %v2912_v8 = vld [vmem:[%s4984_s27 + $0x43] sm:$0xff] }
 0x1f7   : > { %v1943_v18 = vpop.f32.mrf.mxu1 }
 0x1f8   : > { %v1958_v3 = vadd.f32 %v1940_v62, %v1840_v46  ;;  %3950 = vmatmul.msk.f32.gmra.mxu3 %vm359_vm1, %v2553_v9  ;;  %3964 = vmatmul.msk.f32.gmra.mxu0 %vm359_vm1, %v2788_v1 }
 0x1f9   : > { %3992 = vmatmul.msk.f32.gmra.mxu2 %vm359_vm1, %v2907_v26 }
 0x1fa   : > { %3978 = vmatmul.msk.f32.gmra.mxu1 %vm359_vm1, %v2789_v25  ;;  %v5163_v23 = vadd.f32 %v2058_v31, %v1958_v3  ;;  %v2558_v31 = vld [vmem:[%s4984_s27 + $0x39] sm:$0xff] }
 0x1fb   : > { %v1707_v52 = vpop.f32.mrf.mxu3 }
 0x1fc   : > { %v2061_v19 = vpop.f32.mrf.mxu2  ;;  %v1723_v30 = vadd.f32 %v1707_v52, %v5028_v61 }
 0x1fd   : > { %v1828_v28 = vpop.f32.mrf.mxu0 }
 0x1fe   : > { %v1841_v35 = vadd.f32 %v1825_v17, %v1723_v30  ;;  %v2794_v17 = vld [vmem:[%s4984_s27 + $0x42] sm:$0xff]  ;;  %v2913_v30 = vld [vmem:[%s4984_s27 + $0x4b] sm:$0xff] }
 0x1ff   : > { %v1946_v63 = vpop.f32.mrf.mxu1 }
 0x200   : > { %v1959_v56 = vadd.f32 %v1943_v18, %v1841_v35  ;;  %3951 = vmatmul.msk.f32.gmra.mxu3 %vm359_vm1, %v2554_v24  ;;  %3965 = vmatmul.msk.f32.gmra.mxu0 %vm359_vm1, %v2789_v25 }
 0x201   : > { %3993 = vmatmul.msk.f32.gmra.mxu2 %vm359_vm1, %v2908_v27 }
 0x202   : > { %3979 = vmatmul.msk.f32.gmra.mxu1 %vm359_vm1, %v2790_v51  ;;  %v5173_v0 = vadd.f32 %v2061_v19, %v1959_v56  ;;  %v2559_v19 = vld [vmem:[%s4984_s27 + $0x41] sm:$0xff] }
 0x203   : > { %v1710_v61 = vpop.f32.mrf.mxu3 }
 0x204   : > { %v2064_v44 = vpop.f32.mrf.mxu2  ;;  %v1724_v32 = vadd.f32 %v1710_v61, %v5039_v12 }
 0x205   : > { %v2267_v54 = vpop.f32.mrf.mxu0 }
 0x206   : > { %v1842_v6 = vadd.f32 %v1828_v28, %v1724_v32  ;;  %v2795_v28 = vld [vmem:[%s4984_s27 + $0x4a] sm:$0xff]  ;;  %v2914_v32 = vld [vmem:[%s4984_s27 + $0x53] sm:$0xff] }
 0x207   : > { %v2385_v29 = vpop.f32.mrf.mxu1 }
 0x208   : > { %v1960_v39 = vadd.f32 %v1946_v63, %v1842_v6  ;;  %3952 = vmatmul.msk.f32.gmra.mxu3 %vm359_vm1, %v2555_v34  ;;  %3966 = vmatmul.msk.f32.gmra.mxu0 %vm359_vm1, %v2790_v51 }
 0x209   : > { %3994 = vmatmul.msk.f32.gmra.mxu2 %vm359_vm1, %v2909_v36 }
 0x20a   : > { %3980 = vmatmul.msk.f32.gmra.mxu1 %vm359_vm1, %v2791_v37  ;;  %v5183_v40 = vadd.f32 %v2064_v44, %v1960_v39  ;;  %v2560_v44 = vld [vmem:[%s4984_s27 + $0x49] sm:$0xff] }
 0x20b   : > { %v2149_v12 = vpop.f32.mrf.mxu3 }
 0x20c   : > { %v2503_v41 = vpop.f32.mrf.mxu2  ;;  %v2185_v60 = vadd.f32 %v2149_v12, %v5050_v5 }
 0x20d   : > { %v2270_v57 = vpop.f32.mrf.mxu0 }
 0x20e   : > { %v2303_v43 = vadd.f32 %v2267_v54, %v2185_v60  ;;  %v2796_v54 = vld [vmem:[%s4984_s27 + $0x52] sm:$0xff]  ;;  %v2915_v60 = vld [vmem:[%s4984_s27 + $0x5b] sm:$0xff] }
 0x20f   : > { %v2388_v45 = vpop.f32.mrf.mxu1 }
 0x210   : > { %v2421_v49 = vadd.f32 %v2385_v29, %v2303_v43  ;;  %3953 = vmatmul.msk.f32.gmra.mxu3 %vm359_vm1, %v2556_v58  ;;  %3967 = vmatmul.msk.f32.gmra.mxu0 %vm359_vm1, %v2791_v37 }
 0x211   : > { %3995 = vmatmul.msk.f32.gmra.mxu2 %vm359_vm1, %v2910_v4 }
 0x212   : > { %3981 = vmatmul.msk.f32.gmra.mxu1 %vm359_vm1, %v2792_v48  ;;  %v5193_v50 = vadd.f32 %v2503_v41, %v2421_v49  ;;  %v2561_v41 = vld [vmem:[%s4984_s27 + $0x51] sm:$0xff] }
 0x213   : > { %v2152_v5 = vpop.f32.mrf.mxu3 }
 0x214   : > { %v2506_v33 = vpop.f32.mrf.mxu2  ;;  %v2186_v53 = vadd.f32 %v2152_v5, %v5061_v13 }
 0x215   : > { %v2273_v10 = vpop.f32.mrf.mxu0 }
 0x216   : > { %v2304_v59 = vadd.f32 %v2270_v57, %v2186_v53  ;;  %v2797_v57 = vld [vmem:[%s4984_s27 + $0x5a] sm:$0xff]  ;;  %v2916_v53 = vld [vmem:[%s4984_s27 + $0x63] sm:$0xff] }
 0x217   : > { %v2391_v16 = vpop.f32.mrf.mxu1 }
 0x218   : > { %v2422_v62 = vadd.f32 %v2388_v45, %v2304_v59  ;;  %3954 = vmatmul.msk.f32.gmra.mxu3 %vm359_vm1, %v2557_v38  ;;  %3968 = vmatmul.msk.f32.gmra.mxu0 %vm359_vm1, %v2792_v48 }
 0x219   : > { %3996 = vmatmul.msk.f32.gmra.mxu2 %vm359_vm1, %v2911_v15 }
 0x21a   : > { %3982 = vmatmul.msk.f32.gmra.mxu1 %vm359_vm1, %v2793_v14  ;;  %v5203_v1 = vadd.f32 %v2506_v33, %v2422_v62  ;;  %v2562_v33 = vld [vmem:[%s4984_s27 + $0x59] sm:$0xff] }
 0x21b   : > { %v2155_v13 = vpop.f32.mrf.mxu3 }
 0x21c   : > { %v2509_v42 = vpop.f32.mrf.mxu2  ;;  %v2187_v11 = vadd.f32 %v2155_v13, %v5072_v21 }
 0x21d   : > { %v2276_v26 = vpop.f32.mrf.mxu0 }
 0x21e   : > { %v2305_v9 = vadd.f32 %v2273_v10, %v2187_v11  ;;  %v2798_v10 = vld [vmem:[%s4984_s27 + $0x62] sm:$0xff]  ;;  %v3377_v11 = vld [vmem:[%s4984_s27 + $0x16] sm:$0xff] }
 0x21f   : > { %v2394_v46 = vpop.f32.mrf.mxu1 }
 0x220   : > { %v2423_v18 = vadd.f32 %v2391_v16, %v2305_v9  ;;  %3955 = vmatmul.msk.f32.gmra.mxu3 %vm359_vm1, %v2558_v31  ;;  %3969 = vmatmul.msk.f32.gmra.mxu0 %vm359_vm1, %v2793_v14 }
 0x221   : > { %3997 = vmatmul.msk.f32.gmra.mxu2 %vm359_vm1, %v2912_v8 }
 0x222   : > { %3983 = vmatmul.msk.f32.gmra.mxu1 %vm359_vm1, %v2794_v17  ;;  %v5213_v25 = vadd.f32 %v2509_v42, %v2423_v18  ;;  %v3023_v42 = vld [vmem:[%s4984_s27 + $0xc] sm:$0xff] }
 0x223   : > { %v2158_v21 = vpop.f32.mrf.mxu3 }
 0x224   : > { %v2512_v3 = vpop.f32.mrf.mxu2  ;;  %v2188_v52 = vadd.f32 %v2158_v21, %v5086_v22 }
 0x225   : > { %v2279_v27 = vpop.f32.mrf.mxu0 }
 0x226   : > { %v2306_v24 = vadd.f32 %v2276_v26, %v2188_v52  ;;  %v3024_v26 = vld [vmem:[%s4984_s27 + $0x14] sm:$0xff]  ;;  %v3378_v52 = vld [vmem:[%s4984_s27 + $0x1e] sm:$0xff] }
 0x227   : > { %v2397_v35 = vpop.f32.mrf.mxu1 }
 0x228   : > { %v2424_v63 = vadd.f32 %v2394_v46, %v2306_v24  ;;  %3956 = vmatmul.msk.f32.gmra.mxu3 %vm359_vm1, %v2559_v19  ;;  %3970 = vmatmul.msk.f32.gmra.mxu0 %vm359_vm1, %v2794_v17  ;;  %v3259_v46 = vld [vmem:[%s4984_s27 + $0x15] sm:$0xff] }
 0x229   : > { %3998 = vmatmul.msk.f32.gmra.mxu2 %vm359_vm1, %v2913_v30 }
 0x22a   : > { %3984 = vmatmul.msk.f32.gmra.mxu1 %vm359_vm1, %v2795_v28  ;;  %v5223_v51 = vadd.f32 %v2512_v3, %v2424_v63 }
 0x22b   : > { %v2161_v22 = vpop.f32.mrf.mxu3 }
 0x22c   : > { %v2515_v56 = vpop.f32.mrf.mxu2  ;;  %v2189_v61 = vadd.f32 %v2161_v22, %v5105_v20 }
 0x22d   : > { %v2282_v36 = vpop.f32.mrf.mxu0 }
 0x22e   : > { %v2307_v34 = vadd.f32 %v2279_v27, %v2189_v61  ;;  %v3025_v27 = vld [vmem:[%s4984_s27 + $0x1c] sm:$0xff]  ;;  %v3379_v61 = vld [vmem:[%s4984_s27 + $0x26] sm:$0xff] }
 0x22f   : > { %v2400_v6 = vpop.f32.mrf.mxu1 }
 0x230   : > { %v2425_v29 = vadd.f32 %v2397_v35, %v2307_v34  ;;  %3957 = vmatmul.msk.f32.gmra.mxu3 %vm359_vm1, %v2560_v44  ;;  %3971 = vmatmul.msk.f32.gmra.mxu0 %vm359_vm1, %v2795_v28  ;;  %v3260_v35 = vld [vmem:[%s4984_s27 + $0x1d] sm:$0xff] }
 0x231   : > { %3999 = vmatmul.msk.f32.gmra.mxu2 %vm359_vm1, %v2914_v32 }
 0x232   : > { %3985 = vmatmul.msk.f32.gmra.mxu1 %vm359_vm1, %v2796_v54  ;;  %v5233_v37 = vadd.f32 %v2515_v56, %v2425_v29 }
 0x233   : > { %v2164_v20 = vpop.f32.mrf.mxu3 }
 0x234   : > { %v2518_v39 = vpop.f32.mrf.mxu2  ;;  %v2190_v12 = vadd.f32 %v2164_v20, %v5121_v47 }
 0x235   : > { %v2285_v4 = vpop.f32.mrf.mxu0 }
 0x236   : > { %v2308_v58 = vadd.f32 %v2282_v36, %v2190_v12  ;;  %v3026_v36 = vld [vmem:[%s4984_s27 + $0x24] sm:$0xff]  ;;  %v3380_v12 = vld [vmem:[%s4984_s27 + $0x2e] sm:$0xff] }
 0x237   : > { %v2403_v43 = vpop.f32.mrf.mxu1 }
 0x238   : > { %v2426_v45 = vadd.f32 %v2400_v6, %v2308_v58  ;;  %3958 = vmatmul.msk.f32.gmra.mxu3 %vm359_vm1, %v2561_v41  ;;  %3972 = vmatmul.msk.f32.gmra.mxu0 %vm359_vm1, %v2796_v54  ;;  %v3261_v6 = vld [vmem:[%s4984_s27 + $0x25] sm:$0xff] }
 0x239   : > { %4000 = vmatmul.msk.f32.gmra.mxu2 %vm359_vm1, %v2915_v60 }
 0x23a   : > { %3986 = vmatmul.msk.f32.gmra.mxu1 %vm359_vm1, %v2797_v57  ;;  %v5243_v48 = vadd.f32 %v2518_v39, %v2426_v45 }
 0x23b   : > { %v2167_v47 = vpop.f32.mrf.mxu3 }
 0x23c   : > { %v2521_v49 = vpop.f32.mrf.mxu2  ;;  %v2191_v5 = vadd.f32 %v2167_v47, %v5132_v55 }
 0x23d   : > { %v2288_v15 = vpop.f32.mrf.mxu0 }
 0x23e   : > { %v2309_v38 = vadd.f32 %v2285_v4, %v2191_v5  ;;  %v3027_v4 = vld [vmem:[%s4984_s27 + $0x2c] sm:$0xff]  ;;  %v3381_v5 = vld [vmem:[%s4984_s27 + $0x36] sm:$0xff] }
 0x23f   : > { %v2406_v59 = vpop.f32.mrf.mxu1 }
 0x240   : > { %v2427_v16 = vadd.f32 %v2403_v43, %v2309_v38  ;;  %3959 = vmatmul.msk.f32.gmra.mxu3 %vm359_vm1, %v2562_v33  ;;  %3973 = vmatmul.msk.f32.gmra.mxu0 %vm359_vm1, %v2797_v57  ;;  %v3262_v43 = vld [vmem:[%s4984_s27 + $0x2d] sm:$0xff] }
 0x241   : > { %4001 = vmatmul.msk.f32.gmra.mxu2 %vm359_vm1, %v2916_v53 }
 0x242   : > { %3987 = vmatmul.msk.f32.gmra.mxu1 %vm359_vm1, %v2798_v10  ;;  %v5253_v55 = vadd.f32 %v2521_v49, %v2427_v16 }
 0x243   : > { %v2170_v14 = vpop.f32.mrf.mxu3 }
 0x244   : > { %v2524_v62 = vpop.f32.mrf.mxu2  ;;  %v2192_v13 = vadd.f32 %v2170_v14, %v5143_v2 }
 0x245   : > { %v2291_v8 = vpop.f32.mrf.mxu0 }
 0x246   : > { %v2310_v31 = vadd.f32 %v2288_v15, %v2192_v13  ;;  %v3028_v15 = vld [vmem:[%s4984_s27 + $0x34] sm:$0xff]  ;;  %v3382_v13 = vld [vmem:[%s4984_s27 + $0x3e] sm:$0xff] }
 0x247   : > { %v2409_v9 = vpop.f32.mrf.mxu1 }
 0x248   : > { %v2428_v17 = vadd.f32 %v2406_v59, %v2310_v31  ;;  %4004 = vmatmul.msk.f32.vlgmr.msra.gmra.mxu3 %vm359_vm1, %v3023_v42  ;;  %4018 = vmatmul.msk.f32.vlgmr.msra.gmra.mxu0 %vm359_vm1, %v3024_v26  ;;  %v3263_v59 = vld [vmem:[%s4984_s27 + $0x35] sm:$0xff] }
 0x249   : > { %4046 = vmatmul.msk.f32.vlgmr.msra.gmra.mxu2 %vm359_vm1, %v3377_v11 }
 0x24a   : > { %4032 = vmatmul.msk.f32.vlgmr.msra.gmra.mxu1 %vm359_vm1, %v3259_v46  ;;  %v5264_v2 = vadd.f32 %v2524_v62, %v2428_v17 }
 0x24b   : > { %v2173_v18 = vpop.f32.mrf.mxu3 }
 0x24c   : > { %v2527_v21 = vpop.f32.mrf.mxu2  ;;  %v2193_v3 = vadd.f32 %v2173_v18, %v5153_v7 }
 0x24d   : > { %v2294_v30 = vpop.f32.mrf.mxu0 }
 0x24e   : > { %v2311_v19 = vadd.f32 %v2291_v8, %v2193_v3  ;;  %v3029_v8 = vld [vmem:[%s4984_s27 + $0x3c] sm:$0xff] }
 0x24f   : > { %v2412_v24 = vpop.f32.mrf.mxu1 }
 0x250   : > { %v2429_v28 = vadd.f32 %v2409_v9, %v2311_v19  ;;  %4005 = vmatmul.msk.f32.gmra.mxu3 %vm359_vm1, %v3024_v26  ;;  %4019 = vmatmul.msk.f32.gmra.mxu0 %vm359_vm1, %v3025_v27  ;;  %v3264_v9 = vld [vmem:[%s4984_s27 + $0x3d] sm:$0xff] }
 0x251   : > { %4047 = vmatmul.msk.f32.gmra.mxu2 %vm359_vm1, %v3378_v52 }
 0x252   : > { %4033 = vmatmul.msk.f32.gmra.mxu1 %vm359_vm1, %v3260_v35  ;;  %v5274_v63 = vadd.f32 %v2527_v21, %v2429_v28  ;;  %v3383_v21 = vld [vmem:[%s4984_s27 + $0x46] sm:$0xff] }
 0x253   : > { %v2176_v7 = vpop.f32.mrf.mxu3 }
 0x254   : > { %v2530_v22 = vpop.f32.mrf.mxu2  ;;  %v2194_v56 = vadd.f32 %v2176_v7, %v5163_v23 }
 0x255   : > { %v2297_v32 = vpop.f32.mrf.mxu0 }
 0x256   : > { %v2312_v44 = vadd.f32 %v2294_v30, %v2194_v56  ;;  %v3030_v30 = vld [vmem:[%s4984_s27 + $0x44] sm:$0xff] }
 0x257   : > { %v2415_v34 = vpop.f32.mrf.mxu1 }
 0x258   : > { %v2430_v54 = vadd.f32 %v2412_v24, %v2312_v44  ;;  %4006 = vmatmul.msk.f32.gmra.mxu3 %vm359_vm1, %v3025_v27  ;;  %4020 = vmatmul.msk.f32.gmra.mxu0 %vm359_vm1, %v3026_v36  ;;  %v3265_v24 = vld [vmem:[%s4984_s27 + $0x45] sm:$0xff] }
 0x259   : > { %4048 = vmatmul.msk.f32.gmra.mxu2 %vm359_vm1, %v3379_v61 }
 0x25a   : > { %4034 = vmatmul.msk.f32.gmra.mxu1 %vm359_vm1, %v3261_v6  ;;  %v5284_v29 = vadd.f32 %v2530_v22, %v2430_v54  ;;  %v3384_v22 = vld [vmem:[%s4984_s27 + $0x4e] sm:$0xff] }
 0x25b   : > { %v2179_v23 = vpop.f32.mrf.mxu3 }
 0x25c   : > { %v2533_v20 = vpop.f32.mrf.mxu2  ;;  %v2195_v39 = vadd.f32 %v2179_v23, %v5173_v0 }
 0x25d   : > { %v2300_v60 = vpop.f32.mrf.mxu0 }
 0x25e   : > { %v2313_v41 = vadd.f32 %v2297_v32, %v2195_v39  ;;  %v3031_v32 = vld [vmem:[%s4984_s27 + $0x4c] sm:$0xff] }
 0x25f   : > { %v2418_v58 = vpop.f32.mrf.mxu1 }
 0x260   : > { %v2431_v57 = vadd.f32 %v2415_v34, %v2313_v41  ;;  %4007 = vmatmul.msk.f32.gmra.mxu3 %vm359_vm1, %v3026_v36  ;;  %4021 = vmatmul.msk.f32.gmra.mxu0 %vm359_vm1, %v3027_v4  ;;  %v3266_v34 = vld [vmem:[%s4984_s27 + $0x4d] sm:$0xff] }
 0x261   : > { %4049 = vmatmul.msk.f32.gmra.mxu2 %vm359_vm1, %v3380_v12 }
 0x262   : > { %4035 = vmatmul.msk.f32.gmra.mxu1 %vm359_vm1, %v3262_v43  ;;  %v5294_v45 = vadd.f32 %v2533_v20, %v2431_v57  ;;  %v3385_v20 = vld [vmem:[%s4984_s27 + $0x56] sm:$0xff] }
 0x263   : > { %v2182_v0 = vpop.f32.mrf.mxu3 }
 0x264   : > { %v2536_v47 = vpop.f32.mrf.mxu2  ;;  %v2196_v49 = vadd.f32 %v2182_v0, %v5183_v40 }
 0x265   : > { %v2739_v53 = vpop.f32.mrf.mxu0 }
 0x266   : > { %v2314_v33 = vadd.f32 %v2300_v60, %v2196_v49  ;;  %v3032_v60 = vld [vmem:[%s4984_s27 + $0x54] sm:$0xff] }
 0x267   : > { %v2857_v38 = vpop.f32.mrf.mxu1 }
 0x268   : > { %v2432_v10 = vadd.f32 %v2418_v58, %v2314_v33  ;;  %4008 = vmatmul.msk.f32.gmra.mxu3 %vm359_vm1, %v3027_v4  ;;  %4022 = vmatmul.msk.f32.gmra.mxu0 %vm359_vm1, %v3028_v15  ;;  %v3267_v58 = vld [vmem:[%s4984_s27 + $0x55] sm:$0xff] }
 0x269   : > { %4050 = vmatmul.msk.f32.gmra.mxu2 %vm359_vm1, %v3381_v5 }
 0x26a   : > { %4036 = vmatmul.msk.f32.gmra.mxu1 %vm359_vm1, %v3263_v59  ;;  %v5304_v16 = vadd.f32 %v2536_v47, %v2432_v10  ;;  %v3386_v47 = vld [vmem:[%s4984_s27 + $0x5e] sm:$0xff] }
 0x26b   : > { %v2621_v40 = vpop.f32.mrf.mxu3 }
 0x26c   : > { %v2975_v14 = vpop.f32.mrf.mxu2  ;;  %v2657_v62 = vadd.f32 %v2621_v40, %v5193_v50 }
 0x26d   : > { %v2742_v11 = vpop.f32.mrf.mxu0 }
 0x26e   : > { %v2775_v42 = vadd.f32 %v2739_v53, %v2657_v62  ;;  %v3033_v53 = vld [vmem:[%s4984_s27 + $0x5c] sm:$0xff] }
 0x26f   : > { %v2860_v31 = vpop.f32.mrf.mxu1 }
 0x270   : > { %v2893_v26 = vadd.f32 %v2857_v38, %v2775_v42  ;;  %4009 = vmatmul.msk.f32.gmra.mxu3 %vm359_vm1, %v3028_v15  ;;  %4023 = vmatmul.msk.f32.gmra.mxu0 %vm359_vm1, %v3029_v8  ;;  %v3268_v38 = vld [vmem:[%s4984_s27 + $0x5d] sm:$0xff] }
 0x271   : > { %4051 = vmatmul.msk.f32.gmra.mxu2 %vm359_vm1, %v3382_v13 }
 0x272   : > { %4037 = vmatmul.msk.f32.gmra.mxu1 %vm359_vm1, %v3264_v9  ;;  %v5314_v46 = vadd.f32 %v2975_v14, %v2893_v26  ;;  %v3387_v14 = vld [vmem:[%s4984_s27 + $0x66] sm:$0xff] }
 0x273   : > { %v2624_v50 = vpop.f32.mrf.mxu3 }
 0x274   : > { %v2978_v17 = vpop.f32.mrf.mxu2  ;;  %v2658_v18 = vadd.f32 %v2624_v50, %v5203_v1 }
 0x275   : > { %v2745_v52 = vpop.f32.mrf.mxu0 }
 0x276   : > { %v2776_v3 = vadd.f32 %v2742_v11, %v2658_v18  ;;  %v3034_v11 = vld [vmem:[%s4984_s27 + $0x64] sm:$0xff] }
 0x277   : > { %v2863_v19 = vpop.f32.mrf.mxu1 }
 0x278   : > { %v2894_v27 = vadd.f32 %v2860_v31, %v2776_v3  ;;  %4010 = vmatmul.msk.f32.gmra.mxu3 %vm359_vm1, %v3029_v8  ;;  %4024 = vmatmul.msk.f32.gmra.mxu0 %vm359_vm1, %v3030_v30  ;;  %v3269_v31 = vld [vmem:[%s4984_s27 + $0x65] sm:$0xff] }
 0x279   : > { %4052 = vmatmul.msk.f32.gmra.mxu2 %vm359_vm1, %v3383_v21 }
 0x27a   : > { %4038 = vmatmul.msk.f32.gmra.mxu1 %vm359_vm1, %v3265_v24  ;;  %v5324_v35 = vadd.f32 %v2978_v17, %v2894_v27  ;;  %v3388_v17 = vld [vmem:[%s4984_s27 + $0x6e] sm:$0xff] }
 0x27b   : > { %v2627_v1 = vpop.f32.mrf.mxu3 }
 0x27c   : > { %v2981_v28 = vpop.f32.mrf.mxu2  ;;  %v2659_v7 = vadd.f32 %v2627_v1, %v5213_v25 }
 0x27d   : > { %v2748_v61 = vpop.f32.mrf.mxu0 }
 0x27e   : > { %v2777_v56 = vadd.f32 %v2745_v52, %v2659_v7  ;;  %v3152_v52 = vld [vmem:[%s4984_s27 + $0x6c] sm:$0xff] }
 0x27f   : > { %v2866_v44 = vpop.f32.mrf.mxu1 }
 0x280   : > { %v2895_v36 = vadd.f32 %v2863_v19, %v2777_v56  ;;  %4011 = vmatmul.msk.f32.gmra.mxu3 %vm359_vm1, %v3030_v30  ;;  %4025 = vmatmul.msk.f32.gmra.mxu0 %vm359_vm1, %v3031_v32  ;;  %v3270_v19 = vld [vmem:[%s4984_s27 + $0x6d] sm:$0xff]  ;;  %s4070_s27 = smul.u32 96, %s4226_s19 }
 0x281   : > { %4053 = vmatmul.msk.f32.gmra.mxu2 %vm359_vm1, %v3384_v22 }
 0x282   : > { %4039 = vmatmul.msk.f32.gmra.mxu1 %vm359_vm1, %v3266_v34  ;;  %v5334_v6 = vadd.f32 %v2981_v28, %v2895_v36  ;;  %s3520_s5 = sadd.s32 %s4070_s27, %s4069_s24  ;;  %s4164_s27 = scalar_lea.hbm %s5470_s4, 1536 }
 0x283   : > { %v2630_v25 = vpop.f32.mrf.mxu3  ;;  %s4058_s6 = sshll.u32 %s3520_s5, 3 }
 0x284   : > { %v2984_v54 = vpop.f32.mrf.mxu2  ;;  %v2660_v23 = vadd.f32 %v2630_v25, %v5223_v51  ;;  %s3522_s19 = scalar_lea.hbm %s5470_s4, %s4058_s6 }
 0x285   : > { %v2751_v12 = vpop.f32.mrf.mxu0  ;;  %s3525_s11 = sshll.u32 %s3522_s19, 4  ;;  %s3526_s11 = int_to_ptr.hbm [resolvable:$true] %s3525_s11 }
 0x286   : > { %v2778_v39 = vadd.f32 %v2748_v61, %v2660_v23  ;;  %s4158_s13 = sshra.s32 %s3526_s11, 4  ;;  %s4159_s13 = int_to_ptr.hbm [resolvable:$true] %s4158_s13 }
 0x287   : > { %v2869_v41 = vpop.f32.mrf.mxu1  ;;  %s4160_s14 = scalar_lea.hbm %s4159_s13, 96  ;;  %p4165_p6 = scmp.lt.s32.totalorder %s4159_s13, %s5470_s4 }
 0x288   : > { %v2896_v4 = vadd.f32 %v2866_v44, %v2778_v39  ;;  %4012 = vmatmul.msk.f32.gmra.mxu3 %vm359_vm1, %v3031_v32  ;;  %4026 = vmatmul.msk.f32.gmra.mxu0 %vm359_vm1, %v3032_v60  ;;  %p4161_p2 = scmp.ne.s32.totalorder %s4159_s13, %s4160_s14  ;;  %p4166_p7 = scmp.lt.s32.totalorder %s4164_s27, %s4160_s14 }
 0x289   : > { %4054 = vmatmul.msk.f32.gmra.mxu2 %vm359_vm1, %v3385_v20 }
 0x28a   : > { %4040 = vmatmul.msk.f32.gmra.mxu1 %vm359_vm1, %v3267_v58  ;;  %v5344_v43 = vadd.f32 %v2984_v54, %v2896_v4  ;;  %p4162_p4 = pnand %p4161_p2, %p4318_p3  ;;  %p4167_p9 = por %p4166_p7, %p4165_p6 }
 0x28b   : > { %v2633_v51 = vpop.f32.mrf.mxu3 }
 0x28c   : > { %v2987_v57 = vpop.f32.mrf.mxu2  ;;  %v2661_v0 = vadd.f32 %v2633_v51, %v5233_v37  ;;  %p4163_p5 = pneg %p4162_p4 }
 0x28d   : > { %v2754_v5 = vpop.f32.mrf.mxu0 }
 0x28e   : > { %v2779_v49 = vadd.f32 %v2751_v12, %v2661_v0  ;;  %p4168_p10 = pnand %p4167_p9, %p4163_p5 }
 0x28f   : > { %v2872_v33 = vpop.f32.mrf.mxu1 }
 0x290   : > { %v2897_v15 = vadd.f32 %v2869_v41, %v2779_v49  ;;  %4013 = vmatmul.msk.f32.gmra.mxu3 %vm359_vm1, %v3032_v60  ;;  %4027 = vmatmul.msk.f32.gmra.mxu0 %vm359_vm1, %v3033_v53 }
 0x291   : > { %4055 = vmatmul.msk.f32.gmra.mxu2 %vm359_vm1, %v3386_v47 }
 0x292   : > { %4041 = vmatmul.msk.f32.gmra.mxu1 %vm359_vm1, %v3268_v38  ;;  %v5354_v59 = vadd.f32 %v2987_v57, %v2897_v15 }
 0x293   : > { %v2636_v37 = vpop.f32.mrf.mxu3 }
 0x294   : > { %v2990_v10 = vpop.f32.mrf.mxu2  ;;  %v2662_v40 = vadd.f32 %v2636_v37, %v5243_v48 }
 0x295   : > { %v2757_v13 = vpop.f32.mrf.mxu0 }
 0x296   : > { %v2780_v62 = vadd.f32 %v2754_v5, %v2662_v40 }
 0x297   : > { %v2875_v42 = vpop.f32.mrf.mxu1 }
 0x298   : > { %v2898_v8 = vadd.f32 %v2872_v33, %v2780_v62  ;;  %4014 = vmatmul.msk.f32.gmra.mxu3 %vm359_vm1, %v3033_v53  ;;  %4028 = vmatmul.msk.f32.gmra.mxu0 %vm359_vm1, %v3034_v11 }
 0x299   : > { %4056 = vmatmul.msk.f32.gmra.mxu2 %vm359_vm1, %v3387_v14 }
 0x29a   : > { %4042 = vmatmul.msk.f32.gmra.mxu1 %vm359_vm1, %v3269_v31  ;;  %v5364_v9 = vadd.f32 %v2990_v10, %v2898_v8 }
 0x29b   : > { %v2639_v48 = vpop.f32.mrf.mxu3 }
 0x29c   : > { %v2993_v26 = vpop.f32.mrf.mxu2  ;;  %v2663_v50 = vadd.f32 %v2639_v48, %v5253_v55 }
 0x29d   : > { %v2760_v21 = vpop.f32.mrf.mxu0 }
 0x29e   : > { %v2781_v18 = vadd.f32 %v2757_v13, %v2663_v50 }
 0x29f   : > { %v2878_v3 = vpop.f32.mrf.mxu1 }
 0x2a0   : > { %v2899_v30 = vadd.f32 %v2875_v42, %v2781_v18  ;;  %4015 = vmatmul.msk.f32.gmra.mxu3 %vm359_vm1, %v3034_v11  ;;  %4029 = vmatmul.msk.f32.gmra.mxu0 %vm359_vm1, %v3152_v52 }
 0x2a1   : > { %4057 = vmatmul.msk.f32.gmra.mxu2 %vm359_vm1, %v3388_v17 }
 0x2a2   : > { %4043 = vmatmul.msk.f32.gmra.mxu1 %vm359_vm1, %v3270_v19  ;;  %v5374_v24 = vadd.f32 %v2993_v26, %v2899_v30 }
 0x2a3   : > { %v2642_v27 = vpop.f32.mrf.mxu3 }
 0x2a4   : > { %v2996_v1 = vpop.f32.mrf.mxu2  ;;  %v2664_v55 = vadd.f32 %v2642_v27, %v5264_v2 }
 0x2a5   : > { %v2763_v7 = vpop.f32.mrf.mxu0 }
 0x2a6   : > { %v2782_v28 = vadd.f32 %v2760_v21, %v2664_v55 }
 0x2a7   : > { %v2881_v22 = vpop.f32.mrf.mxu1 }
 0x2a8   : > { %v2900_v56 = vadd.f32 %v2878_v3, %v2782_v28 }
 0x2aa   : > { %v5377_v61 = vadd.f32 %v2996_v1, %v2900_v56 }
 0x2ab   : > { %v2645_v44 = vpop.f32.mrf.mxu3 }
 0x2ac   : > { %v2999_v32 = vpop.f32.mrf.mxu2  ;;  %v2665_v34 = vadd.f32 %v2645_v44, %v5274_v63 }
 0x2ad   : > { %v2766_v25 = vpop.f32.mrf.mxu0 }
 0x2ae   : > { %v2783_v36 = vadd.f32 %v2763_v7, %v2665_v34 }
 0x2af   : > { %v2884_v54 = vpop.f32.mrf.mxu1 }
 0x2b0   : > { %v2901_v23 = vadd.f32 %v2881_v22, %v2783_v36 }
 0x2b2   : > { %v5380_v20 = vadd.f32 %v2999_v32, %v2901_v23 }
 0x2b3   : > { %v2648_v39 = vpop.f32.mrf.mxu3 }
 0x2b4   : > { %v3002_v12 = vpop.f32.mrf.mxu2  ;;  %v2666_v2 = vadd.f32 %v2648_v39, %v5284_v29 }
 0x2b5   : > { %v2769_v60 = vpop.f32.mrf.mxu0 }
 0x2b6   : > { %v2784_v41 = vadd.f32 %v2766_v25, %v2666_v2 }
 0x2b7   : > { %v2887_v58 = vpop.f32.mrf.mxu1 }
 0x2b8   : > { %v2902_v4 = vadd.f32 %v2884_v54, %v2784_v41 }
 0x2ba   : > { %v5383_v51 = vadd.f32 %v3002_v12, %v2902_v4 }
 0x2bb   : > { %v2651_v57 = vpop.f32.mrf.mxu3 }
 0x2bc   : > { %v3005_v0 = vpop.f32.mrf.mxu2  ;;  %v2667_v63 = vadd.f32 %v2651_v57, %v5294_v45 }
 0x2bd   : > { %v2772_v49 = vpop.f32.mrf.mxu0 }
 0x2be   : > { %v2785_v47 = vadd.f32 %v2769_v60, %v2667_v63 }
 0x2bf   : > { %v2890_v5 = vpop.f32.mrf.mxu1 }
 0x2c0   : > { %v2903_v33 = vadd.f32 %v2887_v58, %v2785_v47 }
 0x2c2   : > { %v5386_v53 = vadd.f32 %v3005_v0, %v2903_v33 }
 0x2c3   : > { %v2654_v38 = vpop.f32.mrf.mxu3 }
 0x2c4   : > { %v3008_v29 = vpop.f32.mrf.mxu2  ;;  %v2668_v15 = vadd.f32 %v2654_v38, %v5304_v16 }
 0x2c5   : > { %v3211_v10 = vpop.f32.mrf.mxu0 }
 0x2c6   : > { %v2786_v37 = vadd.f32 %v2772_v49, %v2668_v15 }
 0x2c7   : > { %v3329_v40 = vpop.f32.mrf.mxu1 }
 0x2c8   : > { %v2904_v14 = vadd.f32 %v2890_v5, %v2786_v37 }
 0x2ca   : > { %v5389_v62 = vadd.f32 %v3008_v29, %v2904_v14 }
 0x2cb   : > { %v3093_v13 = vpop.f32.mrf.mxu3 }
 0x2cc   : > { %v3447_v45 = vpop.f32.mrf.mxu2  ;;  %v3129_v42 = vadd.f32 %v3093_v13, %v5314_v46 }
 0x2cd   : > { %v3214_v31 = vpop.f32.mrf.mxu0 }
 0x2ce   : > { %v3247_v11 = vadd.f32 %v3211_v10, %v3129_v42 }
 0x2cf   : > { %v3332_v8 = vpop.f32.mrf.mxu1 }
 0x2d0   : > { %v3365_v48 = vadd.f32 %v3329_v40, %v3247_v11 }
 0x2d2   : > { %v3483_v26 = vadd.f32 %v3447_v45, %v3365_v48 }
 0x2d3   : > { %v3096_v50 = vpop.f32.mrf.mxu3 }
 0x2d4   : > { %v3450_v16 = vpop.f32.mrf.mxu2  ;;  %3495 = vst [vmem:[%s5395_s9] sm:$0xff] %v3483_v26  ;;  %v3130_v17 = vadd.f32 %v3096_v50, %v5324_v35 }
 0x2d5   : > { %v3217_v21 = vpop.f32.mrf.mxu0 }
 0x2d6   : > { %v3248_v18 = vadd.f32 %v3214_v31, %v3130_v17 }
 0x2d7   : > { %v3335_v46 = vpop.f32.mrf.mxu1 }
 0x2d8   : > { %v3366_v3 = vadd.f32 %v3332_v8, %v3248_v18 }
 0x2da   : > { %v3484_v52 = vadd.f32 %v3450_v16, %v3366_v3 }
 0x2db   : > { %v3099_v19 = vpop.f32.mrf.mxu3 }
 0x2dc   : > { %v3453_v30 = vpop.f32.mrf.mxu2  ;;  %3496 = vst [vmem:[%s5395_s9 + $0x8] sm:$0xff] %v3484_v52  ;;  %v3131_v27 = vadd.f32 %v3099_v19, %v5334_v6 }
 0x2dd   : > { %v3220_v55 = vpop.f32.mrf.mxu0 }
 0x2de   : > { %v3249_v1 = vadd.f32 %v3217_v21, %v3131_v27 }
 0x2df   : > { %v3338_v28 = vpop.f32.mrf.mxu1 }
 0x2e0   : > { %v3367_v7 = vadd.f32 %v3335_v46, %v3249_v1 }
 0x2e2   : > { %v3485_v22 = vadd.f32 %v3453_v30, %v3367_v7 }
 0x2e3   : > { %v3102_v56 = vpop.f32.mrf.mxu3 }
 0x2e4   : > { %v3456_v44 = vpop.f32.mrf.mxu2  ;;  %3497 = vst [vmem:[%s5395_s9 + $0x10] sm:$0xff] %v3485_v22  ;;  %v3132_v35 = vadd.f32 %v3102_v56, %v5344_v43 }
 0x2e5   : > { %v3223_v34 = vpop.f32.mrf.mxu0 }
 0x2e6   : > { %v3250_v32 = vadd.f32 %v3220_v55, %v3132_v35 }
 0x2e7   : > { %v3341_v36 = vpop.f32.mrf.mxu1 }
 0x2e8   : > { %v3368_v25 = vadd.f32 %v3338_v28, %v3250_v32 }
 0x2ea   : > { %v3486_v54 = vadd.f32 %v3456_v44, %v3368_v25 }
 0x2eb   : > { %v3105_v23 = vpop.f32.mrf.mxu3 }
 0x2ec   : > { %v3459_v39 = vpop.f32.mrf.mxu2  ;;  %3498 = vst [vmem:[%s5395_s9 + $0x18] sm:$0xff] %v3486_v54  ;;  %v3133_v6 = vadd.f32 %v3105_v23, %v5354_v59 }
 0x2ed   : > { %v3226_v2 = vpop.f32.mrf.mxu0 }
 0x2ee   : > { %v3251_v12 = vadd.f32 %v3223_v34, %v3133_v6 }
 0x2ef   : > { %v3344_v41 = vpop.f32.mrf.mxu1 }
 0x2f0   : > { %v3369_v60 = vadd.f32 %v3341_v36, %v3251_v12 }
 0x2f2   : > { %v3487_v58 = vadd.f32 %v3459_v39, %v3369_v60 }
 0x2f3   : > { %v3108_v4 = vpop.f32.mrf.mxu3 }
 0x2f4   : > { %v3462_v57 = vpop.f32.mrf.mxu2  ;;  %3499 = vst [vmem:[%s5395_s9 + $0x20] sm:$0xff] %v3487_v58  ;;  %v3134_v43 = vadd.f32 %v3108_v4, %v5364_v9 }
 0x2f5   : > { %v3229_v63 = vpop.f32.mrf.mxu0 }
 0x2f6   : > { %v3252_v0 = vadd.f32 %v3226_v2, %v3134_v43 }
 0x2f7   : > { %v3347_v47 = vpop.f32.mrf.mxu1 }
 0x2f8   : > { %v3370_v49 = vadd.f32 %v3344_v41, %v3252_v0 }
 0x2fa   : > { %v3488_v5 = vadd.f32 %v3462_v57, %v3370_v49 }
 0x2fb   : > { %v3111_v33 = vpop.f32.mrf.mxu3 }
 0x2fc   : > { %v3465_v38 = vpop.f32.mrf.mxu2  ;;  %3500 = vst [vmem:[%s5395_s9 + $0x28] sm:$0xff] %v3488_v5  ;;  %v3135_v59 = vadd.f32 %v3111_v33, %v5374_v24 }
 0x2fd   : > { %v3232_v15 = vpop.f32.mrf.mxu0 }
 0x2fe   : > { %v3253_v29 = vadd.f32 %v3229_v63, %v3135_v59 }
 0x2ff   : > { %v3350_v37 = vpop.f32.mrf.mxu1 }
 0x300   : > { %v3371_v10 = vadd.f32 %v3347_v47, %v3253_v29 }
 0x302   : > { %v3489_v40 = vadd.f32 %v3465_v38, %v3371_v10 }
 0x303   : > { %v3114_v14 = vpop.f32.mrf.mxu3 }
 0x304   : > { %v3468_v13 = vpop.f32.mrf.mxu2  ;;  %3501 = vst [vmem:[%s5395_s9 + $0x30] sm:$0xff] %v3489_v40  ;;  %v3136_v9 = vadd.f32 %v3114_v14, %v5377_v61 }
 0x305   : > { %v3235_v42 = vpop.f32.mrf.mxu0 }
 0x306   : > { %v3254_v45 = vadd.f32 %v3232_v15, %v3136_v9 }
 0x307   : > { %v3353_v11 = vpop.f32.mrf.mxu1 }
 0x308   : > { %v3372_v31 = vadd.f32 %v3350_v37, %v3254_v45 }
 0x30a   : > { %v3490_v8 = vadd.f32 %v3468_v13, %v3372_v31 }
 0x30b   : > { %v3117_v48 = vpop.f32.mrf.mxu3 }
 0x30c   : > { %v3471_v24 = vpop.f32.mrf.mxu2  ;;  %3502 = vst [vmem:[%s5395_s9 + $0x38] sm:$0xff] %v3490_v8  ;;  %v3137_v26 = vadd.f32 %v3117_v48, %v5380_v20 }
 0x30d   : > { %v3238_v16 = vpop.f32.mrf.mxu0 }
 0x30e   : > { %v3255_v50 = vadd.f32 %v3235_v42, %v3137_v26 }
 0x30f   : > { %v3356_v18 = vpop.f32.mrf.mxu1 }
 0x310   : > { %v3373_v17 = vadd.f32 %v3353_v11, %v3255_v50 }
 0x312   : > { %v3491_v21 = vadd.f32 %v3471_v24, %v3373_v17 }
 0x313   : > { %v3120_v61 = vpop.f32.mrf.mxu3 }
 0x314   : > { %v3474_v46 = vpop.f32.mrf.mxu2  ;;  %3503 = vst [vmem:[%s5395_s9 + $0x40] sm:$0xff] %v3491_v21  ;;  %v3138_v3 = vadd.f32 %v3120_v61, %v5383_v51 }
 0x315   : > { %v3241_v30 = vpop.f32.mrf.mxu0 }
 0x316   : > { %v3256_v52 = vadd.f32 %v3238_v16, %v3138_v3 }
 0x317   : > { %v3359_v20 = vpop.f32.mrf.mxu1 }
 0x318   : > { %v3374_v19 = vadd.f32 %v3356_v18, %v3256_v52 }
 0x31a   : > { %v3492_v27 = vadd.f32 %v3474_v46, %v3374_v19 }
 0x31b   : > { %v3123_v1 = vpop.f32.mrf.mxu3 }
 0x31c   : > { %3504 = vst [vmem:[%s5395_s9 + $0x48] sm:$0xff] %v3492_v27  ;;  %v3139_v55 = vadd.f32 %v3123_v1, %v5386_v53  ;;  %v3477_v28 = vpop.f32.mrf.mxu2 }
 0x31d   : > { %v3244_v44 = vpop.f32.mrf.mxu0 }
 0x31e   : > { %v3257_v7 = vadd.f32 %v3241_v30, %v3139_v55 }
 0x31f   : > { %v3362_v32 = vpop.f32.mrf.mxu1 }
 0x320   : > { %v3375_v22 = vadd.f32 %v3359_v20, %v3257_v7 }
 0x322   : > { %v3493_v51 = vadd.f32 %v3477_v28, %v3375_v22 }
 0x323   : > { %v3126_v56 = vpop.f32.mrf.mxu3 }
 0x324   : > { %3505 = vst [vmem:[%s5395_s9 + $0x50] sm:$0xff] %v3493_v51  ;;  %v3140_v35 = vadd.f32 %v3126_v56, %v5389_v62  ;;  %v3480_v34 = vpop.f32.mrf.mxu2 }
 0x326   : > { %v3258_v53 = vadd.f32 %v3244_v44, %v3140_v35 }
 0x328   : > { %v3376_v36 = vadd.f32 %v3362_v32, %v3258_v53 }
 0x32a   : > { %v3494_v25 = vadd.f32 %v3480_v34, %v3376_v36 }
 0x32c   : > { %3506 = vst [vmem:[%s5395_s9 + $0x58] sm:$0xff] %v3494_v25 }
 0x32d   : > { %4171 = shalt.err (!%p4168_p10)
}
 0x32e   : > { %s4240_s30 = smov 128   ;;  %s4241_s9 = smov 8  }
 0x32f   : > { %4071 = dma.vmem_to_hbm [thread:$0]  (%p4318_p3), %s3524_s10, 1536, %s3526_s11, %s3508_s12, %s4240_s30, %s4240_s30, %s4241_s9  }
 0x330 PF: > { %p4077_p11 = scmp.ge.s32.totalorder %s4238_s22, 2  ;;  %s3540_s18 = sand.u32 1, %s4210_s15  }
 0x331   : > { %s3541_s8 = scalar_lea.sflag [#allocation3], %s3540_s18 }
 0x332   : > { %p4074_p12 = pnand %p4077_p11, %p4327_p8 }
 0x334   : > { %p4075_p13 = pneg %p4074_p12 }
 0x336   : > { %4205 = dma.done.wait (%p4075_p13), %s3541_s8, 1536  }
 0x337   : > { %4207 = vsyncadd (%p4075_p13), %s3541_s8, 4294965760  ;;  %s17_s22 = sadd.s32 1, %s4238_s22   ;;  %s5473_s15 = smov %s4214_s16 }
 0x338   : > { %p14_p0 = scmp.ge.s32.totalorder %s17_s22, 18   ;;  %s5474_s16 = smov %s4218_s17 }
 0x339   : > { %s5475_s17 = smov %s4336_s7  ;;  %s5476_s18 = smov %s4230_s20 }
 0x33a   : > { %s5477_s19 = smov %s4234_s21  ;;  %s5478_s20 = smov %s5481_s25 }
 0x33b   : > { %s5479_s21 = smov %s5485_s26  ;;  %16 = sbr.rel (!%p14_p0) target bundleno = 5 (0x5), region = 106 }
 0x340   :  { %3547 = vsyncpa [#allocation3], 1 }
 0x341   :  { %3549 = vsyncpa [#allocation3 + $0x1], 1 }

</bundles_post_ra>
